<compile_context>
chip_gen: v6e
topology: v6e:2x2x1
jax: 0.10.0
libtpu: 0.0.40
codegen_flags: <defaults>
</compile_context>

<pallas_src>
import functools

import jax
import jax.numpy as jnp
from jax.experimental import pallas as pl
from jax.experimental.pallas import tpu as pltpu


N_CH = 2
C_BRANCH = 512
CHS = C_BRANCH // N_CH        # 256
C_BACKBONE = 384              # channels out of osnet.conv3[0] (stand-in)
FEATS = 128                   # args.feats
CIN_PAD = 8                   # RGB (3) padded to 8 for a sublane-aligned stem K
HW_TILE_CAP = 2048            # biggest lever: amortize ~0.35us/step overhead
VMEM_LIMIT_BYTES = 48 << 20   # covers v5e's 16 MiB default scoped limit,
                              # leaves headroom inside v7x's 64 MiB VMEM


# ---------------------------------------------------------------------------
# Fused Pallas kernel: stem + branches + pooling + all three heads
# ---------------------------------------------------------------------------
def _gc_fused_kernel(inv_hw, rows_mult8,
                     x_ref, w_bb_ref, sb_bb_ref,
                     w_br_ref, sb_br_ref,
                     w_red0_ref, sb_red0_ref, w_sh_ref, sb_sh_ref,
                     sb_c0_ref, sb_c1_ref,
                     f_ref,
                     gmax_acc, csum_acc):
    h = pl.program_id(1)

    @pl.when(h == 0)
    def _init():
        gmax_acc[...] = jnp.full_like(gmax_acc, -jnp.inf)
        csum_acc[...] = jnp.zeros_like(csum_acc)

    def affine(y, sb_ref):                       # folded BN: y*scale + shift (f32)
        return y * sb_ref[0:1, :] + sb_ref[1:2, :]

    # backbone stem (1x1-conv stand-in) + BN + ReLU  -> (t_hw, 384)
    x = x_ref[0]                                 # (t_hw, CIN_PAD) bf16
    feat = jnp.dot(x, w_bb_ref[...], preferred_element_type=jnp.float32)
    feat = jnp.maximum(affine(feat, sb_bb_ref), 0.0).astype(jnp.bfloat16)

    # merged global+channel branch (1x1-conv stand-ins) -> (t_hw, 1024)
    y = jnp.dot(feat, w_br_ref[...], preferred_element_type=jnp.float32)
    y = affine(y, sb_br_ref)
    glo = y[:, :C_BRANCH]                        # ReLU deferred past max-pool
    cha = jnp.maximum(y[:, C_BRANCH:], 0.0)

    # running pools as (8, 512) sublane partials (pure-VPU per-tile update)
    if rows_mult8:
        gmax_acc[...] = jnp.maximum(
            gmax_acc[...], jnp.max(glo.reshape(-1, 8, C_BRANCH), axis=0))
        csum_acc[...] = csum_acc[...] + jnp.sum(
            cha.reshape(-1, 8, C_BRANCH), axis=0)
    else:
        # rare fallback: tile rows not a multiple of 8
        gm = jnp.max(glo, axis=0, keepdims=True)
        gmax_acc[...] = jnp.maximum(gmax_acc[...],
                                    jnp.broadcast_to(gm, gmax_acc.shape))
        csum_acc[0:1, :] = csum_acc[0:1, :] + jnp.sum(cha, axis=0, keepdims=True)

    # heads: run once per batch element, on the last HW tile
    @pl.when(h == pl.num_programs(1) - 1)
    def _heads():
        # cross-sublane fold paid once per batch element; deferred ReLU on glo
        gmax = jnp.maximum(jnp.max(gmax_acc[...], axis=0, keepdims=True), 0.0)
        cavg = jnp.sum(csum_acc[...], axis=0, keepdims=True) * inv_hw

        # f_glo = BNNeck3: BN1d( conv1x1_512->feats( max-pooled glo ) )
        f_glo = jnp.dot(gmax.astype(jnp.bfloat16), w_red0_ref[...],
                        preferred_element_type=jnp.float32)
        f_glo = affine(f_glo, sb_red0_ref)

        # channel split + shared conv1x1 + BN2d + ReLU + per-branch BNNeck BN1d
        c0 = cavg[:, :CHS].astype(jnp.bfloat16)
        c1 = cavg[:, CHS:].astype(jnp.bfloat16)
        w_sh = w_sh_ref[...]
        y0 = jnp.maximum(
            affine(jnp.dot(c0, w_sh, preferred_element_type=jnp.float32), sb_sh_ref), 0.0)
        y1 = jnp.maximum(
            affine(jnp.dot(c1, w_sh, preferred_element_type=jnp.float32), sb_sh_ref), 0.0)
        f_c0 = affine(y0, sb_c0_ref)
        f_c1 = affine(y1, sb_c1_ref)

        # lane-dense output slab: [ f_glo | f_c0 | f_c1 ]  -> (1, 1, 3*FEATS)
        f_ref[...] = jnp.concatenate([f_glo, f_c0, f_c1],
                                     axis=1).reshape(1, 1, 3 * FEATS)


def _pick_hw_tile(hw, cap=HW_TILE_CAP):
    """Largest divisor of hw that is <= cap, preferring multiples of 16, then 8."""
    for step in (16, 8):
        divs = [t for t in range(step, min(cap, hw) + 1, step) if hw % t == 0]
        if divs:
            return max(divs)
    # TODO(synk): masked remainder tiles for HW with no multiple-of-8 divisor.
    return hw


def g_c_forward(x_nchw, params):
    B, Cin, H, W = x_nchw.shape
    # NCHW -> NHWC, /2 spatial subsample (stand-in for conv1-stride2 + maxpool).
    # TODO(synk): full pretrained OSNet backbone/branches (7x7 conv, OS blocks,
    # lite 3x3 convs, channel gates) have no clean synthetic equivalent; they are
    # approximated by fused 1x1 conv + BN + ReLU stages with matching channels.
    x = jnp.transpose(x_nchw, (0, 2, 3, 1))[:, ::2, ::2, :]
    HW = x.shape[1] * x.shape[2]
    x = x.reshape(B, HW, Cin)
    x = jnp.pad(x, ((0, 0), (0, 0), (0, CIN_PAD - Cin))).astype(jnp.bfloat16)

    t_hw = _pick_hw_tile(HW)
    n_hw = HW // t_hw

    kern = functools.partial(_gc_fused_kernel, 1.0 / float(HW), t_hw % 8 == 0)
    const = lambda b, h: (0, 0)    # weights / folded-BN tables: block index never
    #                                changes, so the pipeline does not re-DMA them.

    # TODO(synk): optional v7x batch-1 path — split the HW reduction across the
    # two TensorCores (leading parallel axis of size 2 + partial-output combine).
    f = pl.pallas_call(
        kern,
        out_shape=jax.ShapeDtypeStruct((B, 1, 3 * FEATS), jnp.float32),
        grid_spec=pltpu.PrefetchScalarGridSpec(
            num_scalar_prefetch=0,
            grid=(B, n_hw),
            in_specs=[
                pl.BlockSpec((1, t_hw, CIN_PAD), lambda b, h: (b, h, 0)),
                pl.BlockSpec((CIN_PAD, C_BACKBONE), const),
                pl.BlockSpec((2, C_BACKBONE), const),
                pl.BlockSpec((C_BACKBONE, 2 * C_BRANCH), const),
                pl.BlockSpec((2, 2 * C_BRANCH), const),
                pl.BlockSpec((C_BRANCH, FEATS), const),
                pl.BlockSpec((2, FEATS), const),
                pl.BlockSpec((CHS, FEATS), const),
                pl.BlockSpec((2, FEATS), const),
                pl.BlockSpec((2, FEATS), const),
                pl.BlockSpec((2, FEATS), const),
            ],
            out_specs=pl.BlockSpec((1, 1, 3 * FEATS), lambda b, h: (b, 0, 0)),
            scratch_shapes=[pltpu.VMEM((8, C_BRANCH), jnp.float32),   # max partials
                            pltpu.VMEM((8, C_BRANCH), jnp.float32)],  # sum partials
        ),
        compiler_params=pltpu.CompilerParams(
            dimension_semantics=("parallel", "arbitrary"),
            vmem_limit_bytes=VMEM_LIMIT_BYTES),
    )(x, params["w_bb"], params["sb_bb"],
      params["w_branch"], params["sb_branch"],
      params["w_red0"], params["sb_red0"], params["w_shared"], params["sb_shared"],
      params["sb_ch0"], params["sb_ch1"])

    # (B, 1, 3*feats) lane-dense slab -> (B, feats, 3) == torch.stack(..., dim=2)
    return jnp.transpose(f.reshape(B, 3, FEATS), (0, 2, 1))


# ---------------------------------------------------------------------------
# Parameters (deterministic synthetic init — no checkpoint loading)
# ---------------------------------------------------------------------------
def _bn_fold(gamma, beta, mean, var, eps=1e-5):
    scale = gamma / jnp.sqrt(var + eps)
    shift = beta - mean * scale
    return jnp.stack([scale, shift], axis=0)          # (2, C) f32


def _bn_stats(key, c):
    k1, k2 = jax.random.split(key)
    gamma = jnp.ones((c,), jnp.float32)
    beta = jnp.zeros((c,), jnp.float32)
    mean = 0.1 * jax.random.normal(k1, (c,), jnp.float32)
    var = 0.5 + jax.random.uniform(k2, (c,), jnp.float32)
    return _bn_fold(gamma, beta, mean, var)


def _kaiming(key, cin, cout):
    return jax.random.normal(key, (cin, cout), jnp.float32) * jnp.sqrt(2.0 / cin)


def init_params(key, cin=3):
    ks = jax.random.split(key, 12)
    p = {}
    w_bb = _kaiming(ks[0], cin, C_BACKBONE)                       # (3, 384)
    p["w_bb"] = jnp.pad(w_bb, ((0, CIN_PAD - cin), (0, 0))).astype(jnp.bfloat16)
    p["sb_bb"] = _bn_stats(ks[1], C_BACKBONE)
    # global + channel branch weights merged column-wise: (384, 1024), (2, 1024)
    w_glo = _kaiming(ks[2], C_BACKBONE, C_BRANCH)
    w_cha = _kaiming(ks[4], C_BACKBONE, C_BRANCH)
    p["w_branch"] = jnp.concatenate([w_glo, w_cha], axis=1).astype(jnp.bfloat16)
    p["sb_branch"] = jnp.concatenate(
        [_bn_stats(ks[3], C_BRANCH), _bn_stats(ks[5], C_BRANCH)], axis=1)
    # reduction_0 = BNNeck3(512, num_classes, feats): conv1x1 512->feats + BN1d
    p["w_red0"] = _kaiming(ks[6], C_BRANCH, FEATS).astype(jnp.bfloat16)
    p["sb_red0"] = _bn_stats(ks[7], FEATS)
    # shared = conv1x1 chs->feats (no bias) + BN2d + ReLU
    p["w_shared"] = _kaiming(ks[8], CHS, FEATS).astype(jnp.bfloat16)
    p["sb_shared"] = _bn_stats(ks[9], FEATS)
    # reduction_ch_0 / reduction_ch_1 = BNNeck(feats): BN1d
    p["sb_ch0"] = _bn_stats(ks[10], FEATS)
    p["sb_ch1"] = _bn_stats(ks[11], FEATS)
    # classifiers are training-only (eval path returns after-neck feats) — omitted.
    return p


# ---------------------------------------------------------------------------
# Pure-JAX reference (same bf16 casts, ReLU *before* pooling as in torch)
# ---------------------------------------------------------------------------
def g_c_reference(x_nchw, params):
    B, Cin, H, W = x_nchw.shape
    x = jnp.transpose(x_nchw, (0, 2, 3, 1))[:, ::2, ::2, :]
    HW = x.shape[1] * x.shape[2]
    x = x.reshape(B, HW, Cin)
    x = jnp.pad(x, ((0, 0), (0, 0), (0, CIN_PAD - Cin))).astype(jnp.bfloat16)

    mm = lambda a, w: jnp.dot(a, w, preferred_element_type=jnp.float32)
    aff = lambda y, sb: y * sb[0:1] + sb[1:2]

    w_glo = params["w_branch"][:, :C_BRANCH]
    w_cha = params["w_branch"][:, C_BRANCH:]
    sb_glo = params["sb_branch"][:, :C_BRANCH]
    sb_cha = params["sb_branch"][:, C_BRANCH:]

    feat = jnp.maximum(aff(mm(x.reshape(B * HW, CIN_PAD), params["w_bb"]),
                           params["sb_bb"]), 0.0).astype(jnp.bfloat16)
    glo = jnp.maximum(aff(mm(feat, w_glo), sb_glo), 0.0)
    cha = jnp.maximum(aff(mm(feat, w_cha), sb_cha), 0.0)
    gmax = jnp.max(glo.reshape(B, HW, C_BRANCH), axis=1)
    cavg = jnp.mean(cha.reshape(B, HW, C_BRANCH), axis=1)

    f_glo = aff(mm(gmax.astype(jnp.bfloat16), params["w_red0"]), params["sb_red0"])
    c0 = cavg[:, :CHS].astype(jnp.bfloat16)
    c1 = cavg[:, CHS:].astype(jnp.bfloat16)
    y0 = jnp.maximum(aff(mm(c0, params["w_shared"]), params["sb_shared"]), 0.0)
    y1 = jnp.maximum(aff(mm(c1, params["w_shared"]), params["sb_shared"]), 0.0)
    f_c0 = aff(y0, params["sb_ch0"])
    f_c1 = aff(y1, params["sb_ch1"])
    return jnp.stack([f_glo, f_c0, f_c1], axis=2)          # (B, feats, 3)


if __name__ == "__main__":
    key = jax.random.PRNGKey(0)
    params = init_params(key, cin=3)
    x = jax.random.normal(jax.random.fold_in(key, 99), (2, 3, 16, 16), jnp.float32)

    out = jax.block_until_ready(jax.jit(g_c_forward)(x, params))
    assert out.shape == (2, FEATS, 3), out.shape
    assert bool(jnp.all(jnp.isfinite(out)))

    ref = jax.block_until_ready(jax.jit(g_c_reference)(x, params))
    assert bool(jnp.allclose(out, ref, rtol=1e-2, atol=1e-2)), \
        float(jnp.max(jnp.abs(out - ref)))
    print("KERNEL_OK")
</pallas_src>

<mosaic_0001>
module attributes {stable_mosaic.version = 11 : i64} {
  func.func @_gc_fused_kernel(%arg0: i32, %arg1: i32, %arg2: memref<1x64x8xbf16, #tpu.memory_space<vmem>>, %arg3: memref<8x384xbf16, #tpu.memory_space<vmem>>, %arg4: memref<2x384xf32, #tpu.memory_space<vmem>>, %arg5: memref<384x1024xbf16, #tpu.memory_space<vmem>>, %arg6: memref<2x1024xf32, #tpu.memory_space<vmem>>, %arg7: memref<512x128xbf16, #tpu.memory_space<vmem>>, %arg8: memref<2x128xf32, #tpu.memory_space<vmem>>, %arg9: memref<256x128xbf16, #tpu.memory_space<vmem>>, %arg10: memref<2x128xf32, #tpu.memory_space<vmem>>, %arg11: memref<2x128xf32, #tpu.memory_space<vmem>>, %arg12: memref<2x128xf32, #tpu.memory_space<vmem>>, %arg13: memref<1x1x384xf32, #tpu.memory_space<vmem>>, %arg14: memref<8x512xf32, #tpu.memory_space<vmem>>, %arg15: memref<8x512xf32, #tpu.memory_space<vmem>>) attributes {dimension_semantics = [#tpu.dimension_semantics<parallel>, #tpu.dimension_semantics<arbitrary>], iteration_bounds = array<i64: 2, 1>, scalar_prefetch = 0 : i64, scratch_operands = 2 : i64, tpu.core_type = #tpu.core_type<tc>, window_params = [{transform_indices = @transform_0, window_bounds = array<i64: 1, 64, 8>}, {pipeline_mode = #tpu.pipeline_mode<synchronous>, transform_indices = @transform_1, window_bounds = array<i64: 8, 384>}, {pipeline_mode = #tpu.pipeline_mode<synchronous>, transform_indices = @transform_2, window_bounds = array<i64: 2, 384>}, {pipeline_mode = #tpu.pipeline_mode<synchronous>, transform_indices = @transform_3, window_bounds = array<i64: 384, 1024>}, {pipeline_mode = #tpu.pipeline_mode<synchronous>, transform_indices = @transform_4, window_bounds = array<i64: 2, 1024>}, {pipeline_mode = #tpu.pipeline_mode<synchronous>, transform_indices = @transform_5, window_bounds = array<i64: 512, 128>}, {pipeline_mode = #tpu.pipeline_mode<synchronous>, transform_indices = @transform_6, window_bounds = array<i64: 2, 128>}, {pipeline_mode = #tpu.pipeline_mode<synchronous>, transform_indices = @transform_7, window_bounds = array<i64: 256, 128>}, {pipeline_mode = #tpu.pipeline_mode<synchronous>, transform_indices = @transform_8, window_bounds = array<i64: 2, 128>}, {pipeline_mode = #tpu.pipeline_mode<synchronous>, transform_indices = @transform_9, window_bounds = array<i64: 2, 128>}, {pipeline_mode = #tpu.pipeline_mode<synchronous>, transform_indices = @transform_10, window_bounds = array<i64: 2, 128>}, {transform_indices = @transform_11, window_bounds = array<i64: 1, 1, 384>}]} {
    %c0_i32 = arith.constant 0 : i32
    %0 = arith.cmpi eq, %arg1, %c0_i32 : i32
    %1 = arith.extui %0 : i1 to i32
    %c0_i32_0 = arith.constant 0 : i32
    %2 = arith.cmpi ne, %1, %c0_i32_0 : i32
    scf.if %2 {
      %cst_29 = arith.constant 0xFF800000 : f32
      %41 = vector.broadcast %cst_29 : f32 to vector<8x512xf32>
      %c0_30 = arith.constant 0 : index
      %c0_31 = arith.constant 0 : index
      %42 = vector.load %arg14[%c0_30, %c0_31] : memref<8x512xf32, #tpu.memory_space<vmem>>, vector<8x512xf32>
      tpu.vector_store %arg14[%c0_30, %c0_31], %41 {strides = array<i32>} : memref<8x512xf32, #tpu.memory_space<vmem>>, vector<8x512xf32>,
      %cst_32 = arith.constant 0.000000e+00 : f32
      %43 = vector.broadcast %cst_32 : f32 to vector<8x512xf32>
      %c0_33 = arith.constant 0 : index
      %c0_34 = arith.constant 0 : index
      %44 = vector.load %arg15[%c0_33, %c0_34] : memref<8x512xf32, #tpu.memory_space<vmem>>, vector<8x512xf32>
      tpu.vector_store %arg15[%c0_33, %c0_34], %43 {strides = array<i32>} : memref<8x512xf32, #tpu.memory_space<vmem>>, vector<8x512xf32>,
    } else {
    }
    %c0 = arith.constant 0 : index
    %c0_1 = arith.constant 0 : index
    %c0_2 = arith.constant 0 : index
    %3 = vector.load %arg2[%c0, %c0_1, %c0_2] : memref<1x64x8xbf16, #tpu.memory_space<vmem>>, vector<1x64x8xbf16>
    %4 = vector.shape_cast %3 : vector<1x64x8xbf16> to vector<64x8xbf16>
    %c0_3 = arith.constant 0 : index
    %c0_4 = arith.constant 0 : index
    %5 = vector.load %arg3[%c0_3, %c0_4] : memref<8x384xbf16, #tpu.memory_space<vmem>>, vector<8x384xbf16>
    %cst = arith.constant dense<0.000000e+00> : vector<64x384xf32>
    %6 = tpu.matmul %4, %5, %cst {dimension_numbers = #tpu.dot_dimension_numbers<[1], [0], [0], [1], [0, 0, 1, 1], [], []>} : vector<64x8xbf16>, vector<8x384xbf16>, vector<64x384xf32> -> vector<64x384xf32>
    %c0_5 = arith.constant 0 : index
    %c0_6 = arith.constant 0 : index
    %7 = vector.load %arg4[%c0_5, %c0_6] : memref<2x384xf32, #tpu.memory_space<vmem>>, vector<1x384xf32>
    %8 = vector.broadcast %7 : vector<1x384xf32> to vector<64x384xf32>
    %9 = arith.mulf %6, %8 : vector<64x384xf32>
    %c1 = arith.constant 1 : index
    %c0_7 = arith.constant 0 : index
    %10 = vector.load %arg4[%c1, %c0_7] : memref<2x384xf32, #tpu.memory_space<vmem>>, vector<1x384xf32>
    %11 = vector.broadcast %10 : vector<1x384xf32> to vector<64x384xf32>
    %12 = arith.addf %9, %11 : vector<64x384xf32>
    %cst_8 = arith.constant 0.000000e+00 : f32
    %13 = vector.broadcast %cst_8 : f32 to vector<64x384xf32>
    %14 = arith.maximumf %12, %13 : vector<64x384xf32>
    %15 = arith.truncf %14 : vector<64x384xf32> to vector<64x384xbf16>
    %c0_9 = arith.constant 0 : index
    %c0_10 = arith.constant 0 : index
    %16 = vector.load %arg5[%c0_9, %c0_10] : memref<384x1024xbf16, #tpu.memory_space<vmem>>, vector<384x1024xbf16>
    %cst_11 = arith.constant dense<0.000000e+00> : vector<64x1024xf32>
    %17 = tpu.matmul %15, %16, %cst_11 {dimension_numbers = #tpu.dot_dimension_numbers<[1], [0], [0], [1], [0, 0, 1, 1], [], []>} : vector<64x384xbf16>, vector<384x1024xbf16>, vector<64x1024xf32> -> vector<64x1024xf32>
    %c0_12 = arith.constant 0 : index
    %c0_13 = arith.constant 0 : index
    %18 = vector.load %arg6[%c0_12, %c0_13] : memref<2x1024xf32, #tpu.memory_space<vmem>>, vector<1x1024xf32>
    %19 = vector.broadcast %18 : vector<1x1024xf32> to vector<64x1024xf32>
    %20 = arith.mulf %17, %19 : vector<64x1024xf32>
    %c1_14 = arith.constant 1 : index
    %c0_15 = arith.constant 0 : index
    %21 = vector.load %arg6[%c1_14, %c0_15] : memref<2x1024xf32, #tpu.memory_space<vmem>>, vector<1x1024xf32>
    %22 = vector.broadcast %21 : vector<1x1024xf32> to vector<64x1024xf32>
    %23 = arith.addf %20, %22 : vector<64x1024xf32>
    %24 = vector.extract_strided_slice %23 {offsets = [0, 0], sizes = [64, 512], strides = [1, 1]} : vector<64x1024xf32> to vector<64x512xf32>
    %25 = vector.extract_strided_slice %23 {offsets = [0, 512], sizes = [64, 512], strides = [1, 1]} : vector<64x1024xf32> to vector<64x512xf32>
    %cst_16 = arith.constant 0.000000e+00 : f32
    %26 = vector.broadcast %cst_16 : f32 to vector<64x512xf32>
    %27 = arith.maximumf %25, %26 : vector<64x512xf32>
    %c0_17 = arith.constant 0 : index
    %c0_18 = arith.constant 0 : index
    %28 = vector.load %arg14[%c0_17, %c0_18] : memref<8x512xf32, #tpu.memory_space<vmem>>, vector<8x512xf32>
    %29 = vector.shape_cast %24 : vector<64x512xf32> to vector<8x8x512xf32>
    %cst_19 = arith.constant dense<0xFF800000> : vector<8x512xf32>
    %30 = vector.multi_reduction <maximumf>, %29, %cst_19 [0] : vector<8x8x512xf32> to vector<8x512xf32>
    %31 = arith.maximumf %28, %30 : vector<8x512xf32>
    %c0_20 = arith.constant 0 : index
    %c0_21 = arith.constant 0 : index
    %32 = vector.load %arg14[%c0_20, %c0_21] : memref<8x512xf32, #tpu.memory_space<vmem>>, vector<8x512xf32>
    tpu.vector_store %arg14[%c0_20, %c0_21], %31 {strides = array<i32>} : memref<8x512xf32, #tpu.memory_space<vmem>>, vector<8x512xf32>,
    %c0_22 = arith.constant 0 : index
    %c0_23 = arith.constant 0 : index
    %33 = vector.load %arg15[%c0_22, %c0_23] : memref<8x512xf32, #tpu.memory_space<vmem>>, vector<8x512xf32>
    %34 = vector.shape_cast %27 : vector<64x512xf32> to vector<8x8x512xf32>
    %cst_24 = arith.constant dense<0.000000e+00> : vector<8x512xf32>
    %35 = vector.multi_reduction <add>, %34, %cst_24 [0] : vector<8x8x512xf32> to vector<8x512xf32>
    %36 = arith.addf %33, %35 : vector<8x512xf32>
    %c0_25 = arith.constant 0 : index
    %c0_26 = arith.constant 0 : index
    %37 = vector.load %arg15[%c0_25, %c0_26] : memref<8x512xf32, #tpu.memory_space<vmem>>, vector<8x512xf32>
    tpu.vector_store %arg15[%c0_25, %c0_26], %36 {strides = array<i32>} : memref<8x512xf32, #tpu.memory_space<vmem>>, vector<8x512xf32>,
    %c0_i32_27 = arith.constant 0 : i32
    %38 = arith.cmpi eq, %arg1, %c0_i32_27 : i32
    %39 = arith.extui %38 : i1 to i32
    %c0_i32_28 = arith.constant 0 : i32
    %40 = arith.cmpi ne, %39, %c0_i32_28 : i32
    scf.if %40 {
      %c0_29 = arith.constant 0 : index
      %c0_30 = arith.constant 0 : index
      %41 = vector.load %arg14[%c0_29, %c0_30] : memref<8x512xf32, #tpu.memory_space<vmem>>, vector<8x512xf32>
      %cst_31 = arith.constant dense<0xFF800000> : vector<512xf32>
      %42 = vector.multi_reduction <maximumf>, %41, %cst_31 [0] : vector<8x512xf32> to vector<512xf32>
      %43 = vector.shape_cast %42 : vector<512xf32> to vector<1x512xf32>
      %cst_32 = arith.constant 0.000000e+00 : f32
      %44 = vector.broadcast %cst_32 : f32 to vector<1x512xf32>
      %45 = arith.maximumf %43, %44 : vector<1x512xf32>
      %c0_33 = arith.constant 0 : index
      %c0_34 = arith.constant 0 : index
      %46 = vector.load %arg15[%c0_33, %c0_34] : memref<8x512xf32, #tpu.memory_space<vmem>>, vector<8x512xf32>
      %cst_35 = arith.constant dense<0.000000e+00> : vector<512xf32>
      %47 = vector.multi_reduction <add>, %46, %cst_35 [0] : vector<8x512xf32> to vector<512xf32>
      %48 = vector.shape_cast %47 : vector<512xf32> to vector<1x512xf32>
      %cst_36 = arith.constant 1.562500e-02 : f32
      %49 = vector.broadcast %cst_36 : f32 to vector<1x512xf32>
      %50 = arith.mulf %48, %49 : vector<1x512xf32>
      %51 = arith.truncf %45 : vector<1x512xf32> to vector<1x512xbf16>
      %c0_37 = arith.constant 0 : index
      %c0_38 = arith.constant 0 : index
      %52 = vector.load %arg7[%c0_37, %c0_38] : memref<512x128xbf16, #tpu.memory_space<vmem>>, vector<512x128xbf16>
      %cst_39 = arith.constant dense<0.000000e+00> : vector<1x128xf32>
      %53 = tpu.matmul %51, %52, %cst_39 {dimension_numbers = #tpu.dot_dimension_numbers<[1], [0], [0], [1], [0, 0, 1, 1], [], []>} : vector<1x512xbf16>, vector<512x128xbf16>, vector<1x128xf32> -> vector<1x128xf32>
      %c0_40 = arith.constant 0 : index
      %c0_41 = arith.constant 0 : index
      %54 = vector.load %arg8[%c0_40, %c0_41] : memref<2x128xf32, #tpu.memory_space<vmem>>, vector<1x128xf32>
      %55 = arith.mulf %53, %54 : vector<1x128xf32>
      %c1_42 = arith.constant 1 : index
      %c0_43 = arith.constant 0 : index
      %56 = vector.load %arg8[%c1_42, %c0_43] : memref<2x128xf32, #tpu.memory_space<vmem>>, vector<1x128xf32>
      %57 = arith.addf %55, %56 : vector<1x128xf32>
      %58 = vector.extract_strided_slice %50 {offsets = [0, 0], sizes = [1, 256], strides = [1, 1]} : vector<1x512xf32> to vector<1x256xf32>
      %59 = arith.truncf %58 : vector<1x256xf32> to vector<1x256xbf16>
      %60 = vector.extract_strided_slice %50 {offsets = [0, 256], sizes = [1, 256], strides = [1, 1]} : vector<1x512xf32> to vector<1x256xf32>
      %61 = arith.truncf %60 : vector<1x256xf32> to vector<1x256xbf16>
      %c0_44 = arith.constant 0 : index
      %c0_45 = arith.constant 0 : index
      %62 = vector.load %arg9[%c0_44, %c0_45] : memref<256x128xbf16, #tpu.memory_space<vmem>>, vector<256x128xbf16>
      %cst_46 = arith.constant dense<0.000000e+00> : vector<1x128xf32>
      %63 = tpu.matmul %59, %62, %cst_46 {dimension_numbers = #tpu.dot_dimension_numbers<[1], [0], [0], [1], [0, 0, 1, 1], [], []>} : vector<1x256xbf16>, vector<256x128xbf16>, vector<1x128xf32> -> vector<1x128xf32>
      %c0_47 = arith.constant 0 : index
      %c0_48 = arith.constant 0 : index
      %64 = vector.load %arg10[%c0_47, %c0_48] : memref<2x128xf32, #tpu.memory_space<vmem>>, vector<1x128xf32>
      %65 = arith.mulf %63, %64 : vector<1x128xf32>
      %c1_49 = arith.constant 1 : index
      %c0_50 = arith.constant 0 : index
      %66 = vector.load %arg10[%c1_49, %c0_50] : memref<2x128xf32, #tpu.memory_space<vmem>>, vector<1x128xf32>
      %67 = arith.addf %65, %66 : vector<1x128xf32>
      %cst_51 = arith.constant 0.000000e+00 : f32
      %68 = vector.broadcast %cst_51 : f32 to vector<1x128xf32>
      %69 = arith.maximumf %67, %68 : vector<1x128xf32>
      %cst_52 = arith.constant dense<0.000000e+00> : vector<1x128xf32>
      %70 = tpu.matmul %61, %62, %cst_52 {dimension_numbers = #tpu.dot_dimension_numbers<[1], [0], [0], [1], [0, 0, 1, 1], [], []>} : vector<1x256xbf16>, vector<256x128xbf16>, vector<1x128xf32> -> vector<1x128xf32>
      %c0_53 = arith.constant 0 : index
      %c0_54 = arith.constant 0 : index
      %71 = vector.load %arg10[%c0_53, %c0_54] : memref<2x128xf32, #tpu.memory_space<vmem>>, vector<1x128xf32>
      %72 = arith.mulf %70, %71 : vector<1x128xf32>
      %c1_55 = arith.constant 1 : index
      %c0_56 = arith.constant 0 : index
      %73 = vector.load %arg10[%c1_55, %c0_56] : memref<2x128xf32, #tpu.memory_space<vmem>>, vector<1x128xf32>
      %74 = arith.addf %72, %73 : vector<1x128xf32>
      %cst_57 = arith.constant 0.000000e+00 : f32
      %75 = vector.broadcast %cst_57 : f32 to vector<1x128xf32>
      %76 = arith.maximumf %74, %75 : vector<1x128xf32>
      %c0_58 = arith.constant 0 : index
      %c0_59 = arith.constant 0 : index
      %77 = vector.load %arg11[%c0_58, %c0_59] : memref<2x128xf32, #tpu.memory_space<vmem>>, vector<1x128xf32>
      %78 = arith.mulf %69, %77 : vector<1x128xf32>
      %c1_60 = arith.constant 1 : index
      %c0_61 = arith.constant 0 : index
      %79 = vector.load %arg11[%c1_60, %c0_61] : memref<2x128xf32, #tpu.memory_space<vmem>>, vector<1x128xf32>
      %80 = arith.addf %78, %79 : vector<1x128xf32>
      %c0_62 = arith.constant 0 : index
      %c0_63 = arith.constant 0 : index
      %81 = vector.load %arg12[%c0_62, %c0_63] : memref<2x128xf32, #tpu.memory_space<vmem>>, vector<1x128xf32>
      %82 = arith.mulf %76, %81 : vector<1x128xf32>
      %c1_64 = arith.constant 1 : index
      %c0_65 = arith.constant 0 : index
      %83 = vector.load %arg12[%c1_64, %c0_65] : memref<2x128xf32, #tpu.memory_space<vmem>>, vector<1x128xf32>
      %84 = arith.addf %82, %83 : vector<1x128xf32>
      %85 = tpu.concatenate %57, %80, %84 in 1 : vector<1x128xf32>, vector<1x128xf32>, vector<1x128xf32> -> vector<1x384xf32>
      %86 = vector.shape_cast %85 : vector<1x384xf32> to vector<1x1x384xf32>
      %c0_66 = arith.constant 0 : index
      %c0_67 = arith.constant 0 : index
      %c0_68 = arith.constant 0 : index
      %87 = vector.load %arg13[%c0_66, %c0_67, %c0_68] : memref<1x1x384xf32, #tpu.memory_space<vmem>>, vector<1x1x384xf32>
      tpu.vector_store %arg13[%c0_66, %c0_67, %c0_68], %86 {strides = array<i32>} : memref<1x1x384xf32, #tpu.memory_space<vmem>>, vector<1x1x384xf32>,
    } else {
    }
    return
  }
  func.func @transform_0(%arg0: i32, %arg1: i32) -> (i32, i32, i32) {
    %c0_i32 = arith.constant 0 : i32
    %c0_i32_0 = arith.constant 0 : i32
    return %arg0, %arg1, %c0_i32 : i32, i32, i32
  }
  func.func @transform_1(%arg0: i32, %arg1: i32) -> (i32, i32) {
    %c0_i32 = arith.constant 0 : i32
    %c0_i32_0 = arith.constant 0 : i32
    %c0_i32_1 = arith.constant 0 : i32
    return %c0_i32, %c0_i32_0 : i32, i32
  }
  func.func @transform_2(%arg0: i32, %arg1: i32) -> (i32, i32) {
    %c0_i32 = arith.constant 0 : i32
    %c0_i32_0 = arith.constant 0 : i32
    %c0_i32_1 = arith.constant 0 : i32
    return %c0_i32, %c0_i32_0 : i32, i32
  }
  func.func @transform_3(%arg0: i32, %arg1: i32) -> (i32, i32) {
    %c0_i32 = arith.constant 0 : i32
    %c0_i32_0 = arith.constant 0 : i32
    %c0_i32_1 = arith.constant 0 : i32
    return %c0_i32, %c0_i32_0 : i32, i32
  }
  func.func @transform_4(%arg0: i32, %arg1: i32) -> (i32, i32) {
    %c0_i32 = arith.constant 0 : i32
    %c0_i32_0 = arith.constant 0 : i32
    %c0_i32_1 = arith.constant 0 : i32
    return %c0_i32, %c0_i32_0 : i32, i32
  }
  func.func @transform_5(%arg0: i32, %arg1: i32) -> (i32, i32) {
    %c0_i32 = arith.constant 0 : i32
    %c0_i32_0 = arith.constant 0 : i32
    %c0_i32_1 = arith.constant 0 : i32
    return %c0_i32, %c0_i32_0 : i32, i32
  }
  func.func @transform_6(%arg0: i32, %arg1: i32) -> (i32, i32) {
    %c0_i32 = arith.constant 0 : i32
    %c0_i32_0 = arith.constant 0 : i32
    %c0_i32_1 = arith.constant 0 : i32
    return %c0_i32, %c0_i32_0 : i32, i32
  }
  func.func @transform_7(%arg0: i32, %arg1: i32) -> (i32, i32) {
    %c0_i32 = arith.constant 0 : i32
    %c0_i32_0 = arith.constant 0 : i32
    %c0_i32_1 = arith.constant 0 : i32
    return %c0_i32, %c0_i32_0 : i32, i32
  }
  func.func @transform_8(%arg0: i32, %arg1: i32) -> (i32, i32) {
    %c0_i32 = arith.constant 0 : i32
    %c0_i32_0 = arith.constant 0 : i32
    %c0_i32_1 = arith.constant 0 : i32
    return %c0_i32, %c0_i32_0 : i32, i32
  }
  func.func @transform_9(%arg0: i32, %arg1: i32) -> (i32, i32) {
    %c0_i32 = arith.constant 0 : i32
    %c0_i32_0 = arith.constant 0 : i32
    %c0_i32_1 = arith.constant 0 : i32
    return %c0_i32, %c0_i32_0 : i32, i32
  }
  func.func @transform_10(%arg0: i32, %arg1: i32) -> (i32, i32) {
    %c0_i32 = arith.constant 0 : i32
    %c0_i32_0 = arith.constant 0 : i32
    %c0_i32_1 = arith.constant 0 : i32
    return %c0_i32, %c0_i32_0 : i32, i32
  }
  func.func @transform_11(%arg0: i32, %arg1: i32) -> (i32, i32, i32) {
    %c0_i32 = arith.constant 0 : i32
    %c0_i32_0 = arith.constant 0 : i32
    %c0_i32_1 = arith.constant 0 : i32
    return %arg0, %c0_i32, %c0_i32_0 : i32, i32, i32
  }
}

</mosaic_0001>

<bundles_post_ra>
// kernel: g_c_forward.1
= control target key start
LH: loop header
LB: loop body
LE: loop exit
PB: predicated region body
PF: predicated region fallthrough
CT: control target
= control target key end

     0   :  { %16 = vsyncpa [#allocation5], 0  ;;  %s4159_s17 = smov 0   ;;  %s4161_s18 = smov 0   ;;  %s4929_s0 = inlined_call_operand.vmem [shape: bf16[2,64,8], index: 0, kind: input, shape index: {}]   ;;  %s4930_s1 = inlined_call_operand.vmem [shape: bf16[8,384], index: 1, kind: input, shape index: {}]   ;;  %s4931_s2 = inlined_call_operand.vmem [shape: f32[2,384], index: 2, kind: input, shape index: {}]   ;;  %s4932_s3 = inlined_call_operand.hbm [shape: bf16[384,1024], index: 3, kind: input, shape index: {}]   ;;  %s4933_s4 = inlined_call_operand.vmem [shape: f32[2,1024], index: 4, kind: input, shape index: {}]   ;;  %s4934_s5 = inlined_call_operand.vmem [shape: bf16[512,128], index: 5, kind: input, shape index: {}]   ;;  %s4935_s6 = inlined_call_operand.vmem [shape: f32[2,128], index: 6, kind: input, shape index: {}]   ;;  %s4936_s7 = inlined_call_operand.vmem [shape: bf16[256,128], index: 7, kind: input, shape index: {}]   ;;  %s4937_s8 = inlined_call_operand.vmem [shape: f32[2,128], index: 8, kind: input, shape index: {}]   ;;  %s4938_s9 = inlined_call_operand.vmem [shape: f32[2,128], index: 9, kind: input, shape index: {}]   ;;  %s4939_s10 = inlined_call_operand.vmem [shape: f32[2,128], index: 10, kind: input, shape index: {}]   ;;  %s4940_s11 = inlined_call_operand.vmem [shape: f32[2,1,384], index: 11, kind: output, shape index: {}]  }
   0x1   :  { %s4163_s19 = smov 0  }
   0x2 LB: > { %s3571_s20 = sadd.s32 4294967295, %s4092_s19   ;;  %s34_s21 = sadd.s32 1, %s4088_s18  ;;  %s4092_s19 = sphi %s4163_s19, %s22_s19   ;;  %s4088_s18 = sphi %s4161_s18, %s4944_s18   ;;  %s4084_s17 = sphi %s4159_s17, %s4943_s17  }
   0x3   : > { %p36_p0 = scmp.ge.s32.totalorder %s34_s21, 2  ;;  %p3573_p1 = scmp.ge.s32.totalorder %s4092_s19, 1 }
   0x4   : > { %p303_p2 = scmp.lt.s32.totalorder %s4092_s19, 3  ;;  %p4184_p4 = scmp.eq.s32.totalorder %s3571_s20, 0 }
   0x5   : > { %s4946_s21 = smov (%p36_p0, %s34_s21), 0  ;;  %s4094_s24 = smov [#allocation4]  }
   0x6   : > { %p4180_p3 = pnand %p3573_p1, %p303_p2  ;;  %s321_s25 = sshll.u32 %s4094_s24, 4  ;;  %s322_s25 = int_to_ptr.vmem [resolvable:$true] %s321_s25 }
   0x7   : > { %s4051_s26 = scalar_lea.vmem %s322_s25, 24576  ;;  %p4059_p11 = scmp.lt.s32.totalorder %s322_s25, %s322_s25 }
   0x8   : > { %p3950_p5 = pneg %p4180_p3  ;;  %p4052_p8 = scmp.ne.s32.totalorder %s322_s25, %s4051_s26 }
   0x9   : > { %p4060_p12 = scmp.lt.s32.totalorder %s4051_s26, %s4051_s26 }
   0xa   : > { %p3951_p6 = pnand %p4184_p4, %p3950_p5 }
   0xb   : > { %p4061_p13 = por %p4060_p12, %p4059_p11 }
   0xc   : > { %p4042_p7 = pneg %p3951_p6 }
   0xe   : > { %p4054_p9 = pnand %p4052_p8, %p4042_p7 }
  0x10   : > { %p4055_p10 = pneg %p4054_p9 }
  0x12   : > { %p4062_p0 = pnand %p4061_p13, %p4055_p10 }
  0x14   : > { %4065 = shalt.err (!%p4062_p0)
}
  0x15   : > { %s4095_s27 = smov 512   ;;  %s4096_s28 = smov 32  }
  0x16   : > { %3953 = dma.hbm_to_vmem [thread:$0]  (!%p3951_p6), %s4932_s3, 24576, %s322_s25, [#allocation5], %s4095_s27, %s4095_s27, %s4096_s28  }
  0x17   : > { %371 = sbr.rel (%p4180_p3) target bundleno = 867 (0x363), region = 64 }
  0x1c   : > { %4079 = dma.done.wait (%p4184_p4), [#allocation5], 24576  }
  0x1d   : > { %4081 = vsyncadd (%p4184_p4), [#allocation5], 4294942720  ;;  %p415_p1 = scmp.lt.s32.totalorder %s4084_s17, 1  ;;  %v4097_v0 = vmov 0   ;;  %vm492_vm0 = vcmask 1043456   ;;  %v449_v1 = vld [vmem:[%s4930_s1] sm:$0xff] }
  0x1e   : > { %534 = vmatprep.mubr.bf16.mxu0 %v4097_v0  ;;  %v3986_v2 = vld [vmem:[%s4930_s1 + $0x8] ss:$0 sps:$4 sm:$0xff]   ;;  %v3585_v3 = vcombine.high %v449_v1, %v449_v1  ;;  %v3584_v4 = vcombine.low %v449_v1, %v449_v1  ;;  %vm479_vm1 = vcmask 64512   ;;  %v815_v10 = vld [vmem:[#allocation4 + $0x1c0] sm:$0xff] }
  0x1f   : > { %s4948_s17 = smov (!%p415_p1, %s4084_s17), 1  ;;  %3944 = vmatprep.subr.msk.bf16.mxu1 %vm492_vm0, %v3986_v2  ;;  %v500_v6 = vsel %vm492_vm0, %v3986_v2, 0  ;;  %v819_v11 = vld [vmem:[#allocation4 + $0x1e0] sm:$0xff] }
  0x20   : > { %s3840_s12 = sshll.u32 %s4948_s17, 5  ;;  %3587 = vmatprep.subr.msk.bf16.mxu0 %vm492_vm0, %v3585_v3  ;;  %v494_v8 = vsel %vm492_vm0, %v3584_v4, 0  ;;  %3935 = vmatpush3.bf16.msra.mxu1 %v500_v6  ;;  %v807_v12 = vld [vmem:[#allocation4 + $0x180] sm:$0xff]  ;;  %v3653_v13 = vcombine.low %v815_v10, %v819_v11  ;;  %v3654_v14 = vcombine.high %v815_v10, %v819_v11  ;;  %s3945_s24 = smul.u32 3, %s4948_s17 }
  0x21   : > { %s4210_s15 = scalar_lea.vmem %s4929_s0, %s3840_s12  ;;  %517 = vmatpush1.bf16.msra.mxu0 %v494_v8  ;;  %v811_v15 = vld [vmem:[#allocation4 + $0x1a0] sm:$0xff] }
  0x22   : > { %v3988_v5 = vld [vmem:[%s4210_s15] sm:$0xff]   ;;  %v3989_v7 = vld [vmem:[%s4210_s15 + $0x8] sm:$0xff]   ;;  %v4221_v9 = vld [vmem:[%s4210_s15 + $0x10] sm:$0xff]   ;;  %v3646_v16 = vcombine.high %v807_v12, %v811_v15  ;;  %1911 = vmatprep.subr.bf16.mxu0 %v3654_v14  ;;  %v3645_v19 = vcombine.low %v807_v12, %v811_v15  ;;  %s427_s27 = scalar_lea.vmem %s4940_s11, %s3945_s24 }
  0x23   : > { %3936 = vmatprep.mubr.msk.bf16.mxu1 %vm479_vm1, %v3988_v5  ;;  %v799_v17 = vld [vmem:[#allocation4 + $0x140] sm:$0xff]  ;;  %v4230_v20 = vld [vmem:[%s4210_s15 + $0x18] sm:$0xff]  }
  0x24   : > { %3937 = vmatmul.mubr.msk.bf16.vlgmr.msra.gmra.mxu1 %vm479_vm1, %v3989_v7  ;;  %3588 = vmatmul.mubr.msk.bf16.vlgmr.msra.gmra.mxu0 %vm479_vm1, %v3988_v5  ;;  %v803_v18 = vld [vmem:[#allocation4 + $0x160] sm:$0xff] }
  0x25   : > { %3940 = vmatprep.mubr.msk.bf16.mxu1 %vm479_vm1, %v4221_v9  ;;  %544 = vmatprep.mubr.bf16.mxu0 %v4097_v0  ;;  %v3638_v21 = vcombine.high %v799_v17, %v803_v18  ;;  %v943_v22 = vld [vmem:[#allocation4 + $0x5c0] sm:$0xff]  ;;  %v3637_v30 = vcombine.low %v799_v17, %v803_v18 }
  0x26   : > { %1912 = vmatpush1.bf16.msra.mxu0 %v3653_v13  ;;  %v947_v23 = vld [vmem:[#allocation4 + $0x5e0] sm:$0xff] }
  0x27   : > { %1913 = vmatprep.subr.bf16.mxu0 %v3646_v16  ;;  %v791_v24 = vld [vmem:[#allocation4 + $0x100] sm:$0xff]  ;;  %v3781_v26 = vcombine.low %v943_v22, %v947_v23  ;;  %v3782_v27 = vcombine.high %v943_v22, %v947_v23 }
  0x28   : > { %v795_v25 = vld [vmem:[#allocation4 + $0x120] sm:$0xff] }
  0x29   : > { %v935_v28 = vld [vmem:[#allocation4 + $0x580] sm:$0xff]  ;;  %1984 = vmatprep.subr.bf16.mxu1 %v3782_v27  ;;  %v3630_v34 = vcombine.high %v791_v24, %v795_v25  ;;  %v3629_v41 = vcombine.low %v791_v24, %v795_v25 }
  0x2a   : > { %v939_v29 = vld [vmem:[#allocation4 + $0x5a0] sm:$0xff]  ;;  %1914 = vmatpush1.bf16.msra.mxu0 %v3645_v19  ;;  %1985 = vmatpush1.bf16.msra.mxu1 %v3781_v26 }
  0x2b   : > { %v3774_v31 = vcombine.high %v935_v28, %v939_v29  ;;  %v927_v32 = vld [vmem:[#allocation4 + $0x540] sm:$0xff]  ;;  %1915 = vmatprep.subr.bf16.mxu0 %v3638_v21  ;;  %v3773_v37 = vcombine.low %v935_v28, %v939_v29 }
  0x2c   : > { %v931_v33 = vld [vmem:[#allocation4 + $0x560] sm:$0xff]  ;;  %3941 = vmatmul.mubr.msk.bf16.gmra.mxu1 %vm479_vm1, %v4230_v20  ;;  %3589 = vmatmul.mubr.msk.bf16.gmra.mxu0 %vm479_vm1, %v3989_v7 }
  0x2d   : > { %v783_v35 = vld [vmem:[#allocation4 + $0xc0] sm:$0xff]  ;;  %554 = vmatprep.mubr.bf16.mxu0 %v4097_v0  ;;  %1986 = vmatprep.subr.bf16.mxu1 %v3774_v31  ;;  %v3766_v38 = vcombine.high %v927_v32, %v931_v33  ;;  %v3765_v45 = vcombine.low %v927_v32, %v931_v33 }
  0x2e   : > { %v787_v36 = vld [vmem:[#allocation4 + $0xe0] sm:$0xff]  ;;  %1916 = vmatpush1.bf16.msra.mxu0 %v3637_v30  ;;  %2016 = vmatprep.mubr.bf16.mxu1 %v4097_v0 }
  0x2f   : > { %v919_v39 = vld [vmem:[#allocation4 + $0x500] sm:$0xff]  ;;  %1917 = vmatprep.subr.bf16.mxu0 %v3630_v34  ;;  %v3622_v44 = vcombine.high %v783_v35, %v787_v36  ;;  %1987 = vmatpush1.bf16.msra.mxu1 %v3773_v37  ;;  %v3621_v49 = vcombine.low %v783_v35, %v787_v36 }
  0x30   : > { %v923_v40 = vld [vmem:[#allocation4 + $0x520] sm:$0xff]  ;;  %1988 = vmatprep.subr.bf16.mxu1 %v3766_v38 }
  0x31   : > { %v775_v42 = vld [vmem:[#allocation4 + $0x80] sm:$0xff]  ;;  %v3758_v48 = vcombine.high %v919_v39, %v923_v40  ;;  %v3757_v53 = vcombine.low %v919_v39, %v923_v40 }
  0x32   : > { %v779_v43 = vld [vmem:[#allocation4 + $0xa0] sm:$0xff]  ;;  %1918 = vmatpush1.bf16.msra.mxu0 %v3629_v41 }
  0x33   : > { %v911_v46 = vld [vmem:[#allocation4 + $0x4c0] sm:$0xff]  ;;  %1919 = vmatprep.subr.bf16.mxu0 %v3622_v44  ;;  %v3614_v52 = vcombine.high %v775_v42, %v779_v43  ;;  %1989 = vmatpush1.bf16.msra.mxu1 %v3765_v45  ;;  %v3613_v55 = vcombine.low %v775_v42, %v779_v43  ;;  %v4242_v44 = vld [vmem:[#allocation4 + $0x1c8] sm:$0xff] }
  0x34   : > { %v915_v47 = vld [vmem:[#allocation4 + $0x4e0] sm:$0xff]  ;;  %3590 = vmatmul.mubr.msk.bf16.gmra.mxu0 %vm479_vm1, %v4221_v9  ;;  %1990 = vmatprep.subr.bf16.mxu1 %v3758_v48  ;;  %v4244_v45 = vld [vmem:[#allocation4 + $0x1e8] sm:$0xff] }
  0x35   : > { %v767_v50 = vld [vmem:[#allocation4 + $0x40] sm:$0xff]  ;;  %564 = vmatprep.mubr.bf16.mxu0 %v4097_v0  ;;  %v3750_v54 = vcombine.high %v911_v46, %v915_v47  ;;  %v3749_v59 = vcombine.low %v911_v46, %v915_v47  ;;  %v3656_v46 = vcombine.high %v4242_v44, %v4244_v45  ;;  %v3655_v47 = vcombine.low %v4242_v44, %v4244_v45  ;;  %v4250_v48 = vld [vmem:[#allocation4 + $0x5c8] sm:$0xff] }
  0x36   : > { %v771_v51 = vld [vmem:[#allocation4 + $0x60] sm:$0xff]  ;;  %1920 = vmatpush1.bf16.msra.mxu0 %v3621_v49  ;;  %v4252_v49 = vld [vmem:[#allocation4 + $0x5e8] sm:$0xff] }
  0x37   : > { %v759_v56 = vld [vmem:[#allocation4] sm:$0xff]  ;;  %1921 = vmatprep.subr.bf16.mxu0 %v3614_v52  ;;  %v3606_v58 = vcombine.high %v767_v50, %v771_v51  ;;  %1991 = vmatpush1.bf16.msra.mxu1 %v3757_v53  ;;  %v3605_v60 = vcombine.low %v767_v50, %v771_v51  ;;  %v3784_v50 = vcombine.high %v4250_v48, %v4252_v49  ;;  %v642_v52 = vlaneseq }
  0x38   : > { %v763_v57 = vld [vmem:[#allocation4 + $0x20] sm:$0xff]  ;;  %1992 = vmatprep.subr.bf16.mxu1 %v3750_v54  ;;  %v3783_v51 = vcombine.low %v4250_v48, %v4252_v49  ;;  %v4377_v48 = vld [vmem:[#allocation4 + $0x528] sm:$0xff] }
  0x39   : > { %v879_v61 = vld [vmem:[#allocation4 + $0x3c0] sm:$0xff]  ;;  %v3598_v63 = vcombine.high %v759_v56, %v763_v57  ;;  %v3597_v1 = vcombine.low %v759_v56, %v763_v57  ;;  %v4259_v53 = vshrl.u32 %v642_v52, 7  ;;  %vm3488_vm2 = vcmp.lt.s32.totalorder %v642_v52, 384 }
  0x3a   : > { %1922 = vmatpush1.bf16.msra.mxu0 %v3613_v55  ;;  %v883_v62 = vld [vmem:[#allocation4 + $0x3e0] sm:$0xff] }
  0x3b   : > { %1923 = vmatprep.subr.bf16.mxu0 %v3606_v58  ;;  %1993 = vmatpush1.bf16.msra.mxu1 %v3749_v59  ;;  %v871_v2 = vld [vmem:[#allocation4 + $0x380] sm:$0xff]  ;;  %v3718_v4 = vcombine.high %v879_v61, %v883_v62  ;;  %v3717_v5 = vcombine.low %v879_v61, %v883_v62  ;;  %v4262_v54 = vsub.s32 0, %v4259_v53  ;;  %v4265_v55 = vsub.s32 1, %v4259_v53 }
  0x3c   : > { %3591 = vmatmul.mubr.msk.bf16.gmra.mxu0 %vm479_vm1, %v4230_v20  ;;  %v875_v3 = vld [vmem:[#allocation4 + $0x3a0] sm:$0xff]  ;;  %v4271_v57 = vsub.s32 2, %v4259_v53 }
  0x3d   : > { %v863_v6 = vld [vmem:[#allocation4 + $0x340] sm:$0xff]  ;;  %v3710_v8 = vcombine.high %v871_v2, %v875_v3  ;;  %v3709_v9 = vcombine.low %v871_v2, %v875_v3 }
  0x3e   : > { %1924 = vmatpush1.bf16.msra.mxu0 %v3605_v60  ;;  %v867_v7 = vld [vmem:[#allocation4 + $0x360] sm:$0xff] }
  0x3f   : > { %1925 = vmatprep.subr.bf16.mxu0 %v3598_v63  ;;  %v855_v10 = vld [vmem:[#allocation4 + $0x300] sm:$0xff]  ;;  %v3702_v12 = vcombine.high %v863_v6, %v867_v7  ;;  %v3701_v13 = vcombine.low %v863_v6, %v867_v7 }
  0x40   : > { %v859_v11 = vld [vmem:[#allocation4 + $0x320] sm:$0xff] }
  0x41   : > { %v847_v14 = vld [vmem:[#allocation4 + $0x2c0] sm:$0xff]  ;;  %v3694_v16 = vcombine.high %v855_v10, %v859_v11  ;;  %v3693_v17 = vcombine.low %v855_v10, %v859_v11 }
  0x42   : > { %1926 = vmatpush1.bf16.msra.mxu0 %v3597_v1  ;;  %v851_v15 = vld [vmem:[#allocation4 + $0x2e0] sm:$0xff] }
  0x43   : > { %1927 = vmatprep.subr.bf16.mxu0 %v3718_v4  ;;  %v3686_v18 = vcombine.high %v847_v14, %v851_v15  ;;  %v3685_v19 = vcombine.low %v847_v14, %v851_v15  ;;  %v903_v20 = vld [vmem:[#allocation4 + $0x480] sm:$0xff] }
  0x44   : > { %v907_v21 = vld [vmem:[#allocation4 + $0x4a0] sm:$0xff] }
  0x45   : > { %v3742_v22 = vcombine.high %v903_v20, %v907_v21  ;;  %v3741_v23 = vcombine.low %v903_v20, %v907_v21  ;;  %v839_v24 = vld [vmem:[#allocation4 + $0x280] sm:$0xff] }
  0x46   : > { %1928 = vmatpush2.bf16.msra.mxu0 %v3717_v5  ;;  %v843_v25 = vld [vmem:[#allocation4 + $0x2a0] sm:$0xff] }
  0x47   : > { %1929 = vmatprep.subr.bf16.mxu0 %v3710_v8  ;;  %1994 = vmatprep.subr.bf16.mxu1 %v3742_v22  ;;  %v3678_v26 = vcombine.high %v839_v24, %v843_v25  ;;  %v3677_v27 = vcombine.low %v839_v24, %v843_v25  ;;  %v895_v28 = vld [vmem:[#allocation4 + $0x440] sm:$0xff]  ;;  %v4308_v25 = vld [vmem:[#allocation4 + $0x188] sm:$0xff] }
  0x48   : > { %1995 = vmatpush1.bf16.msra.mxu1 %v3741_v23  ;;  %v899_v29 = vld [vmem:[#allocation4 + $0x460] sm:$0xff] }
  0x49   : > { %v3734_v30 = vcombine.high %v895_v28, %v899_v29  ;;  %v3733_v31 = vcombine.low %v895_v28, %v899_v29  ;;  %v831_v32 = vld [vmem:[#allocation4 + $0x240] sm:$0xff] }
  0x4a   : > { %1930 = vmatpush2.bf16.msra.mxu0 %v3709_v9  ;;  %v835_v33 = vld [vmem:[#allocation4 + $0x260] sm:$0xff] }
  0x4b   : > { %1931 = vmatprep.subr.bf16.mxu0 %v3702_v12  ;;  %1996 = vmatprep.subr.bf16.mxu1 %v3734_v30  ;;  %v3670_v34 = vcombine.high %v831_v32, %v835_v33  ;;  %v3669_v35 = vcombine.low %v831_v32, %v835_v33  ;;  %v887_v36 = vld [vmem:[#allocation4 + $0x400] sm:$0xff] }
  0x4c   : > { %1997 = vmatpush1.bf16.msra.mxu1 %v3733_v31  ;;  %v891_v37 = vld [vmem:[#allocation4 + $0x420] sm:$0xff] }
  0x4d   : > { %v3726_v38 = vcombine.high %v887_v36, %v891_v37  ;;  %v3725_v39 = vcombine.low %v887_v36, %v891_v37  ;;  %v823_v40 = vld [vmem:[#allocation4 + $0x200] sm:$0xff] }
  0x4e   : > { %1932 = vmatpush2.bf16.msra.mxu0 %v3701_v13  ;;  %v827_v41 = vld [vmem:[#allocation4 + $0x220] sm:$0xff] }
  0x4f   : > { %1933 = vmatprep.subr.bf16.mxu0 %v3694_v16  ;;  %1998 = vmatprep.subr.bf16.mxu1 %v3726_v38  ;;  %v3662_v42 = vcombine.high %v823_v40, %v827_v41  ;;  %v3661_v43 = vcombine.low %v823_v40, %v827_v41  ;;  %v640_v56 = vld [vmem:[%s4931_s2] ss:$2 sm:$0x7]  ;;  %v3596_v59 = vld [vmem:[%s4931_s2 + $0x1] ss:$2 sm:$0x7] }
  0x50   : > { %1999 = vmatpush1.bf16.msra.mxu1 %v3725_v39  ;;  %v4274_v58 = vrot.slane %v640_v56, %v4262_v54  ;;  %v4280_v61 = vrot.slane %v640_v56, %v4265_v55  ;;  %v4283_v63 = vrot.slane %v3596_v59, %v4262_v54  ;;  %v4286_v1 = vrot.slane %v640_v56, %v4271_v57  ;;  %v4318_v39 = vld [vmem:[#allocation4 + $0x588] sm:$0xff] }
  0x51   : > { %2057 = vmatprep.subr.bf16.mxu1 %v3656_v46  ;;  %v4290_v3 = vrot.slane %v3596_v59, %v4265_v55  ;;  %v4296_v10 = vrot.slane %v3596_v59, %v4271_v57  ;;  %v4320_v40 = vld [vmem:[#allocation4 + $0x5a8] sm:$0xff] }
  0x52   : > { %1934 = vmatpush2.bf16.msra.mxu0 %v3693_v17 }
  0x53   : > { %1935 = vmatprep.subr.bf16.mxu0 %v3686_v18 }
  0x56   : > { %1936 = vmatpush2.bf16.msra.mxu0 %v3685_v19 }
  0x57   : > { %1937 = vmatprep.subr.bf16.mxu0 %v3678_v26  ;;  %v4310_v26 = vld [vmem:[#allocation4 + $0x1a8] sm:$0xff] }
  0x58   : > { %v3648_v38 = vcombine.high %v4308_v25, %v4310_v26 }
  0x5a   : > { %1938 = vmatpush2.bf16.msra.mxu0 %v3677_v27 }
  0x5b   : > { %1939 = vmatprep.subr.bf16.mxu0 %v3670_v34 }
  0x5e   : > { %1940 = vmatpush2.bf16.msra.mxu0 %v3669_v35 }
  0x5f   : > { %1941 = vmatprep.subr.bf16.mxu0 %v3662_v42 }
  0x62   : > { %1942 = vmatpush2.bf16.msra.mxu0 %v3661_v43 }
  0x63   : > { %2130 = vmatprep.subr.bf16.mxu0 %v3784_v50 }
  0xe4   : > { %v3938_v60 = vpop.f32.mrf.mxu1  ;;  %v536_v62 = vpop.f32.mrf.mxu0 }
  0xe5   : > { %v657_v2 = vmul.f32 %v4274_v58, %v536_v62  ;;  %v665_v32 = vmul.f32 %v3938_v60, %v4286_v1 }
  0xe6   : > { %v609_v4 = vpop.f32.mrf.mxu1  ;;  %v538_v5 = vpop.f32.mrf.mxu0 }
  0xe7   : > { %v659_v6 = vmul.f32 %v4286_v1, %v609_v4  ;;  %v658_v7 = vmul.f32 %v4280_v61, %v538_v5  ;;  %v699_v9 = vadd.f32 %v4283_v63, %v657_v2  ;;  %v4334_v4 = vld [vmem:[#allocation4 + $0x148] sm:$0xff] }
  0xe8   : > { %v3939_v8 = vpop.f32.mrf.mxu1  ;;  %v540_v11 = vpop.f32.mrf.mxu0  ;;  %v4336_v5 = vld [vmem:[#allocation4 + $0x168] sm:$0xff] }
  0xe9   : > { %v700_v12 = vadd.f32 %v4290_v3, %v658_v7  ;;  %v660_v13 = vmul.f32 %v4274_v58, %v540_v11  ;;  %v701_v15 = vadd.f32 %v4296_v10, %v659_v6  ;;  %v723_v21 = vmax.f32 %v699_v9, 0.0 }
  0xea   : > { %v612_v14 = vpop.f32.mrf.mxu1  ;;  %v542_v16 = vpop.f32.mrf.mxu0  ;;  %v668_v22 = vmul.f32 %v3939_v8, %v4286_v1  ;;  %v707_v6 = vadd.f32 %v4296_v10, %v665_v32  ;;  %v3776_v9 = vcombine.high %v4318_v39, %v4320_v40  ;;  %v3640_v44 = vcombine.high %v4334_v4, %v4336_v5 }
  0xeb   : > { %v662_v17 = vmul.f32 %v4286_v1, %v612_v14  ;;  %v702_v18 = vadd.f32 %v4283_v63, %v660_v13  ;;  %v661_v19 = vmul.f32 %v4280_v61, %v542_v16  ;;  %v724_v27 = vmax.f32 %v700_v12, 0.0  ;;  %v4354_v16 = vld [vmem:[#allocation4 + $0x568] sm:$0xff] }
  0xec   : > { %v4304_v20 = vpop.f32.mrf.mxu1  ;;  %v546_v24 = vpop.f32.mrf.mxu0  ;;  %v725_v33 = vmax.f32 %v701_v15, 0.0  ;;  %v710_v43 = vadd.f32 %v4296_v10, %v668_v22  ;;  %v3647_v14 = vcombine.low %v4308_v25, %v4310_v26  ;;  %v4352_v15 = vld [vmem:[#allocation4 + $0x548] sm:$0xff]  ;;  %v731_v26 = vmax.f32 %v707_v6, 0.0 }
  0xed   : > { %v704_v23 = vadd.f32 %v4296_v10, %v662_v17  ;;  %v726_v28 = vmax.f32 %v702_v18, 0.0  ;;  %v703_v29 = vadd.f32 %v4290_v3, %v661_v19  ;;  %v663_v30 = vmul.f32 %v4274_v58, %v546_v24  ;;  %v4367_v24 = vld [vmem:[#allocation4 + $0x108] sm:$0xff] }
  0xee   : > { %v625_v31 = vpop.f32.mrf.mxu1  ;;  %v548_v35 = vpop.f32.mrf.mxu0  ;;  %v734_v17 = vmax.f32 %v710_v43, 0.0  ;;  %v4369_v25 = vld [vmem:[#allocation4 + $0x128] sm:$0xff]  ;;  %v3639_v32 = vcombine.low %v4334_v4, %v4336_v5 }
  0xef   : > { %v728_v34 = vmax.f32 %v704_v23, 0.0  ;;  %v727_v36 = vmax.f32 %v703_v29, 0.0  ;;  %v664_v37 = vmul.f32 %v4280_v61, %v548_v35  ;;  %v4324_v42 = vpack.c.bf16 %v726_v28, %v723_v21 }
  0xf0   : > { %v4322_v41 = vpop.f32.mrf.mxu1  ;;  %v705_v50 = vadd.f32 %v4283_v63, %v663_v30  ;;  %v550_v56 = vpop.f32.mrf.mxu0  ;;  %v671_v8 = vmul.f32 %v4286_v1, %v625_v31  ;;  %v3775_v21 = vcombine.low %v4318_v39, %v4320_v40  ;;  %v3768_v30 = vcombine.high %v4352_v15, %v4354_v16  ;;  %v4375_v31 = vld [vmem:[#allocation4 + $0x508] sm:$0xff] }
  0xf1   : > { %v4327_v46 = vpack.c.bf16 %v728_v34, %v725_v33  ;;  %v4330_v59 = vpack.c.bf16 %v727_v36, %v724_v27  ;;  %v706_v60 = vadd.f32 %v4290_v3, %v664_v37  ;;  %v666_v62 = vmul.f32 %v4274_v58, %v550_v56  ;;  %v4397_v56 = vld [vmem:[#allocation4 + $0xc8] sm:$0xff] }
  0xf2   : > { %v628_v2 = vpop.f32.mrf.mxu1  ;;  %v552_v7 = vpop.f32.mrf.mxu0  ;;  %v729_v18 = vmax.f32 %v705_v50, 0.0  ;;  %v713_v28 = vadd.f32 %v4296_v10, %v671_v8  ;;  %v3767_v33 = vcombine.low %v4352_v15, %v4354_v16  ;;  %v4384_v34 = vpack.c.bf16 %v734_v17, %v731_v26  ;;  %v904_v26 = vld [vmem:[#allocation4 + $0x488] sm:$0xff] }
  0xf3   : > { %2017 = vmatmul.mubr.bf16.vlgmr.msra.gmra.mxu1 %v4327_v46  ;;  %v674_v11 = vmul.f32 %v4286_v1, %v628_v2  ;;  %v708_v12 = vadd.f32 %v4283_v63, %v666_v62  ;;  %v667_v13 = vmul.f32 %v4280_v61, %v552_v7  ;;  %1943 = vmatprep.mubr.bf16.mxu0 %v4330_v59  ;;  %v730_v45 = vmax.f32 %v706_v60, 0.0  ;;  %v788_v60 = vld [vmem:[#allocation4 + $0xe8] sm:$0xff] }
  0xf4   : > { %2058 = vmatpush1.bf16.msra.mxu1 %v3655_v47  ;;  %v556_v19 = vpop.f32.mrf.mxu0  ;;  %1944 = vmatmul.mubr.bf16.vlgmr.msra.gmra.mxu0 %v4324_v42  ;;  %v3760_v50 = vcombine.high %v4375_v31, %v4377_v48  ;;  %v677_v62 = vmul.f32 %v4304_v20, %v4286_v1  ;;  %v737_v2 = vmax.f32 %v713_v28, 0.0  ;;  %v680_v4 = vmul.f32 %v4322_v41, %v4286_v1  ;;  %v912_v20 = vld [vmem:[#allocation4 + $0x4c8] sm:$0xff] }
  0xf5   : > { %2059 = vmatprep.subr.bf16.mxu1 %v3648_v38  ;;  %v732_v47 = vmax.f32 %v708_v12, 0.0  ;;  %v709_v22 = vadd.f32 %v4290_v3, %v667_v13  ;;  %v669_v23 = vmul.f32 %v4274_v58, %v556_v19  ;;  %2131 = vmatpush1.bf16.msra.mxu0 %v3783_v51  ;;  %v716_v29 = vadd.f32 %v4296_v10, %v674_v11  ;;  %v916_v11 = vld [vmem:[#allocation4 + $0x4e8] sm:$0xff] }
  0xf6   : > { %2026 = vmatprep.mubr.bf16.mxu1 %v4097_v0  ;;  %v558_v27 = vpop.f32.mrf.mxu0  ;;  %2132 = vmatprep.subr.bf16.mxu0 %v3776_v9  ;;  %v3632_v38 = vcombine.high %v4367_v24, %v4369_v25  ;;  %v3631_v9 = vcombine.low %v4367_v24, %v4369_v25  ;;  %v3759_v1 = vcombine.low %v4375_v31, %v4377_v48  ;;  %v780_v19 = vld [vmem:[#allocation4 + $0xa8] sm:$0xff] }
  0xf7   : > { %v733_v49 = vmax.f32 %v709_v22, 0.0  ;;  %v670_v51 = vmul.f32 %v4280_v61, %v558_v27  ;;  %v4386_v35 = vpack.c.bf16 %v732_v47, %v729_v18  ;;  %v711_v36 = vadd.f32 %v4283_v63, %v669_v23  ;;  %v776_v18 = vld [vmem:[#allocation4 + $0x88] sm:$0xff] }
  0xf8   : > { %2060 = vmatpush1.bf16.msra.mxu1 %v3647_v14  ;;  %v560_v37 = vpop.f32.mrf.mxu0  ;;  %v740_v6 = vmax.f32 %v716_v29, 0.0  ;;  %v3624_v41 = vcombine.high %v4397_v56, %v788_v60  ;;  %v3752_v22 = vcombine.high %v912_v20, %v916_v11  ;;  %v3623_v25 = vcombine.low %v4397_v56, %v788_v60  ;;  %v908_v27 = vld [vmem:[#allocation4 + $0x4a8] sm:$0xff] }
  0xf9   : > { %2061 = vmatprep.subr.bf16.mxu1 %v3640_v44  ;;  %v4391_v39 = vpack.c.bf16 %v733_v49, %v730_v45  ;;  %v712_v40 = vadd.f32 %v4290_v3, %v670_v51  ;;  %v672_v43 = vmul.f32 %v4274_v58, %v560_v37  ;;  %2133 = vmatpush1.bf16.msra.mxu0 %v3775_v21  ;;  %v735_v12 = vmax.f32 %v711_v36, 0.0  ;;  %v900_v60 = vld [vmem:[#allocation4 + $0x468] sm:$0xff] }
  0xfa   : > { %v562_v5 = vpop.f32.mrf.mxu0  ;;  %2134 = vmatprep.subr.bf16.mxu0 %v3768_v30  ;;  %v719_v21 = vadd.f32 %v4296_v10, %v677_v62  ;;  %v722_v44 = vadd.f32 %v4296_v10, %v680_v4  ;;  %v4418_v45 = vpack.c.bf16 %v740_v6, %v737_v2  ;;  %v3616_v10 = vcombine.high %v776_v18, %v780_v19 }
  0xfb   : > { %2027 = vmatmul.mubr.bf16.gmra.mxu1 %v4384_v34  ;;  %v714_v7 = vadd.f32 %v4283_v63, %v672_v43  ;;  %v673_v8 = vmul.f32 %v4280_v61, %v562_v5  ;;  %1953 = vmatprep.mubr.bf16.mxu0 %v4391_v39  ;;  %v736_v14 = vmax.f32 %v712_v40, 0.0  ;;  %v3751_v51 = vcombine.low %v912_v20, %v916_v11 }
  0xfc   : > { %2062 = vmatpush1.bf16.msra.mxu1 %v3639_v32  ;;  %v566_v13 = vpop.f32.mrf.mxu0  ;;  %1954 = vmatmul.mubr.bf16.gmra.mxu0 %v4386_v35  ;;  %v768_v32 = vld [vmem:[#allocation4 + $0x48] sm:$0xff]  ;;  %v743_v36 = vmax.f32 %v719_v21, 0.0  ;;  %v746_v37 = vmax.f32 %v722_v44, 0.0  ;;  %v3744_v40 = vcombine.high %v904_v26, %v908_v27  ;;  %v3615_v56 = vcombine.low %v776_v18, %v780_v19  ;;  %v817_v19 = vld [vmem:[#allocation4 + $0x1d0] sm:$0xff] }
  0xfd   : > { %2063 = vmatprep.subr.bf16.mxu1 %v3632_v38  ;;  %v738_v15 = vmax.f32 %v714_v7, 0.0  ;;  %v715_v16 = vadd.f32 %v4290_v3, %v673_v8  ;;  %v675_v17 = vmul.f32 %v4274_v58, %v566_v13  ;;  %2135 = vmatpush1.bf16.msra.mxu0 %v3767_v33  ;;  %v772_v33 = vld [vmem:[#allocation4 + $0x68] sm:$0xff]  ;;  %v3743_v7 = vcombine.low %v904_v26, %v908_v27  ;;  %v821_v21 = vld [vmem:[#allocation4 + $0x1f0] sm:$0xff] }
  0xfe   : > { %2036 = vmatprep.mubr.bf16.mxu1 %v4097_v0  ;;  %v568_v47 = vpop.f32.mrf.mxu0  ;;  %2136 = vmatprep.subr.bf16.mxu0 %v3760_v50  ;;  %v3608_v2 = vcombine.high %v768_v32, %v772_v33  ;;  %v760_v8 = vld [vmem:[#allocation4 + $0x8] sm:$0xff]  ;;  %v3607_v11 = vcombine.low %v768_v32, %v772_v33  ;;  %v809_v26 = vld [vmem:[#allocation4 + $0x190] sm:$0xff] }
  0xff   : > { %v739_v23 = vmax.f32 %v715_v16, 0.0  ;;  %v676_v24 = vmul.f32 %v4280_v61, %v568_v47  ;;  %v4422_v28 = vpack.c.bf16 %v738_v15, %v735_v12  ;;  %v717_v29 = vadd.f32 %v4283_v63, %v675_v17  ;;  %v888_v12 = vld [vmem:[#allocation4 + $0x408] sm:$0xff]  ;;  %v813_v27 = vld [vmem:[#allocation4 + $0x1b0] sm:$0xff] }
 0x100   : > { %2064 = vmatpush1.bf16.msra.mxu1 %v3631_v9  ;;  %v570_v30 = vpop.f32.mrf.mxu0  ;;  %v764_v9 = vld [vmem:[#allocation4 + $0x28] sm:$0xff]  ;;  %v801_v32 = vld [vmem:[#allocation4 + $0x150] sm:$0xff] }
 0x101   : > { %2065 = vmatprep.subr.bf16.mxu1 %v3624_v41  ;;  %v4425_v31 = vpack.c.bf16 %v739_v23, %v736_v14  ;;  %v718_v48 = vadd.f32 %v4290_v3, %v676_v24  ;;  %v678_v49 = vmul.f32 %v4274_v58, %v570_v30  ;;  %2137 = vmatpush1.bf16.msra.mxu0 %v3759_v1  ;;  %v896_v58 = vld [vmem:[#allocation4 + $0x448] sm:$0xff]  ;;  %v741_v62 = vmax.f32 %v717_v29, 0.0  ;;  %v805_v33 = vld [vmem:[#allocation4 + $0x170] sm:$0xff] }
 0x102   : > { %v572_v38 = vpop.f32.mrf.mxu0  ;;  %2138 = vmatprep.subr.bf16.mxu0 %v3752_v22  ;;  %v892_v13 = vld [vmem:[#allocation4 + $0x428] sm:$0xff]  ;;  %v3600_v14 = vcombine.high %v760_v8, %v764_v9  ;;  %v3599_v18 = vcombine.low %v760_v8, %v764_v9  ;;  %v3658_v24 = vcombine.high %v817_v19, %v821_v21  ;;  %v3657_v30 = vcombine.low %v817_v19, %v821_v21 }
 0x103   : > { %2037 = vmatmul.mubr.bf16.gmra.mxu1 %v4418_v45  ;;  %v720_v43 = vadd.f32 %v4283_v63, %v678_v49  ;;  %v679_v50 = vmul.f32 %v4280_v61, %v572_v38  ;;  %1963 = vmatprep.mubr.bf16.mxu0 %v4425_v31  ;;  %v742_v4 = vmax.f32 %v718_v48, 0.0  ;;  %v4436_v61 = vpack.c.bf16 %v746_v37, %v743_v36  ;;  %v880_v15 = vld [vmem:[#allocation4 + $0x3c8] sm:$0xff] }
 0x104   : > { %2066 = vmatpush1.bf16.msra.mxu1 %v3623_v25  ;;  %1964 = vmatmul.mubr.bf16.gmra.mxu0 %v4422_v28  ;;  %v3736_v63 = vcombine.high %v896_v58, %v900_v60  ;;  %v884_v16 = vld [vmem:[#allocation4 + $0x3e8] sm:$0xff]  ;;  %v3728_v17 = vcombine.high %v888_v12, %v892_v13  ;;  %v3727_v47 = vcombine.low %v888_v12, %v892_v13 }
 0x105   : > { %2067 = vmatprep.subr.bf16.mxu1 %v3616_v10  ;;  %v744_v5 = vmax.f32 %v720_v43, 0.0  ;;  %v721_v6 = vadd.f32 %v4290_v3, %v679_v50  ;;  %2139 = vmatpush1.bf16.msra.mxu0 %v3751_v51  ;;  %v3735_v3 = vcombine.low %v896_v58, %v900_v60  ;;  %v3720_v44 = vcombine.high %v880_v15, %v884_v16  ;;  %v872_v22 = vld [vmem:[#allocation4 + $0x388] sm:$0xff]  ;;  %v797_v58 = vld [vmem:[#allocation4 + $0x130] sm:$0xff] }
 0x106   : > { %2046 = vmatprep.mubr.bf16.mxu1 %v4097_v0  ;;  %2140 = vmatprep.subr.bf16.mxu0 %v3744_v40  ;;  %v876_v23 = vld [vmem:[#allocation4 + $0x3a8] sm:$0xff]  ;;  %v3719_v25 = vcombine.low %v880_v15, %v884_v16  ;;  %v3650_v49 = vcombine.high %v809_v26, %v813_v27  ;;  %v3649_v37 = vcombine.low %v809_v26, %v813_v27 }
 0x107   : > { %v745_v20 = vmax.f32 %v721_v6, 0.0  ;;  %v4438_v1 = vpack.c.bf16 %v744_v5, %v741_v62  ;;  %v3712_v29 = vcombine.high %v872_v22, %v876_v23  ;;  %v864_v10 = vld [vmem:[#allocation4 + $0x348] sm:$0xff]  ;;  %v3711_v51 = vcombine.low %v872_v22, %v876_v23 }
 0x108   : > { %2068 = vmatpush1.bf16.msra.mxu1 %v3615_v56  ;;  %v868_v48 = vld [vmem:[#allocation4 + $0x368] sm:$0xff]  ;;  %v3642_v43 = vcombine.high %v801_v32, %v805_v33  ;;  %v793_v56 = vld [vmem:[#allocation4 + $0x110] sm:$0xff]  ;;  %v3641_v62 = vcombine.low %v801_v32, %v805_v33 }
 0x109   : > { %2069 = vmatprep.subr.bf16.mxu1 %v3608_v2  ;;  %v4440_v41 = vpack.c.bf16 %v745_v20, %v742_v4  ;;  %2141 = vmatpush1.bf16.msra.mxu0 %v3743_v7  ;;  %v3704_v36 = vcombine.high %v864_v10, %v868_v48  ;;  %v856_v38 = vld [vmem:[#allocation4 + $0x308] sm:$0xff]  ;;  %v3703_v50 = vcombine.low %v864_v10, %v868_v48  ;;  %v785_v7 = vld [vmem:[#allocation4 + $0xd0] sm:$0xff] }
 0x10a   : > { %2142 = vmatprep.subr.bf16.mxu0 %v3736_v63  ;;  %v860_v40 = vld [vmem:[#allocation4 + $0x328] sm:$0xff]  ;;  %v3634_v5 = vcombine.high %v793_v56, %v797_v58  ;;  %v789_v63 = vld [vmem:[#allocation4 + $0xf0] sm:$0xff]  ;;  %v3633_v9 = vcombine.low %v793_v56, %v797_v58 }
 0x10b   : > { %2047 = vmatmul.mubr.bf16.gmra.mxu1 %v4436_v61  ;;  %1973 = vmatprep.mubr.bf16.mxu0 %v4440_v41  ;;  %v3696_v60 = vcombine.high %v856_v38, %v860_v40  ;;  %v848_v2 = vld [vmem:[#allocation4 + $0x2c8] sm:$0xff]  ;;  %v3695_v6 = vcombine.low %v856_v38, %v860_v40  ;;  %v3626_v12 = vcombine.high %v785_v7, %v789_v63 }
 0x10c   : > { %2070 = vmatpush1.bf16.msra.mxu1 %v3607_v11  ;;  %1974 = vmatmul.mubr.bf16.gmra.mxu0 %v4438_v1  ;;  %v852_v4 = vld [vmem:[#allocation4 + $0x2e8] sm:$0xff]  ;;  %v3625_v16 = vcombine.low %v785_v7, %v789_v63 }
 0x10d   : > { %2089 = vmatprep.mubr.bf16.mxu1 %v4330_v59  ;;  %2143 = vmatpush1.bf16.msra.mxu0 %v3735_v3  ;;  %v3688_v8 = vcombine.high %v848_v2, %v852_v4  ;;  %v840_v20 = vld [vmem:[#allocation4 + $0x288] sm:$0xff]  ;;  %v3687_v13 = vcombine.low %v848_v2, %v852_v4  ;;  %v777_v3 = vld [vmem:[#allocation4 + $0x90] sm:$0xff] }
 0x10e   : > { %2071 = vmatprep.subr.bf16.mxu1 %v3600_v14  ;;  %2144 = vmatprep.subr.bf16.mxu0 %v3728_v17  ;;  %v844_v11 = vld [vmem:[#allocation4 + $0x2a8] sm:$0xff]  ;;  %v781_v14 = vld [vmem:[#allocation4 + $0xb0] sm:$0xff] }
 0x10f   : > { %2162 = vmatprep.mubr.bf16.mxu0 %v4097_v0  ;;  %v3680_v15 = vcombine.high %v840_v20, %v844_v11  ;;  %v832_v17 = vld [vmem:[#allocation4 + $0x248] sm:$0xff]  ;;  %v3618_v19 = vcombine.high %v777_v3, %v781_v14  ;;  %v3679_v21 = vcombine.low %v840_v20, %v844_v11  ;;  %v3617_v23 = vcombine.low %v777_v3, %v781_v14 }
 0x110   : > { %2072 = vmatpush1.bf16.msra.mxu1 %v3599_v18  ;;  %v836_v18 = vld [vmem:[#allocation4 + $0x268] sm:$0xff] }
 0x111   : > { %2073 = vmatprep.subr.bf16.mxu1 %v3720_v44  ;;  %2145 = vmatpush1.bf16.msra.mxu0 %v3727_v47  ;;  %v769_v44 = vld [vmem:[#allocation4 + $0x50] sm:$0xff]  ;;  %v3672_v22 = vcombine.high %v832_v17, %v836_v18  ;;  %v3671_v27 = vcombine.low %v832_v17, %v836_v18 }
 0x112   : > { %2203 = vmatprep.subr.bf16.mxu0 %v3658_v24  ;;  %v773_v47 = vld [vmem:[#allocation4 + $0x70] sm:$0xff]  ;;  %v824_v24 = vld [vmem:[#allocation4 + $0x208] sm:$0xff] }
 0x113   : > { %v3610_v26 = vcombine.high %v769_v44, %v773_v47  ;;  %v3609_v48 = vcombine.low %v769_v44, %v773_v47 }
 0x114   : > { %2074 = vmatpush2.bf16.msra.mxu1 %v3719_v25  ;;  %2163 = vmatmul.mubr.bf16.vlgmr.msra.gmra.mxu0 %v4327_v46  ;;  %v828_v25 = vld [vmem:[#allocation4 + $0x228] sm:$0xff] }
 0x115   : > { %2075 = vmatprep.subr.bf16.mxu1 %v3712_v29  ;;  %2204 = vmatpush1.bf16.msra.mxu0 %v3657_v30  ;;  %v761_v29 = vld [vmem:[#allocation4 + $0x10] sm:$0xff]  ;;  %v3664_v10 = vcombine.high %v824_v24, %v828_v25  ;;  %v3663_v33 = vcombine.low %v824_v24, %v828_v25 }
 0x116   : > { %2172 = vmatprep.mubr.bf16.mxu0 %v4097_v0  ;;  %2205 = vmatprep.subr.bf16.mxu0 %v3650_v49  ;;  %v765_v30 = vld [vmem:[#allocation4 + $0x30] sm:$0xff] }
 0x117   : > { %v945_v49 = vld [vmem:[#allocation4 + $0x5d0] sm:$0xff]  ;;  %v3602_v32 = vcombine.high %v761_v29, %v765_v30  ;;  %v3601_v40 = vcombine.low %v761_v29, %v765_v30 }
 0x118   : > { %2076 = vmatpush2.bf16.msra.mxu1 %v3711_v51  ;;  %v949_v51 = vld [vmem:[#allocation4 + $0x5f0] sm:$0xff] }
 0x119   : > { %2077 = vmatprep.subr.bf16.mxu1 %v3704_v36  ;;  %2206 = vmatpush1.bf16.msra.mxu0 %v3649_v37  ;;  %v881_v36 = vld [vmem:[#allocation4 + $0x3d0] sm:$0xff]  ;;  %v3786_v38 = vcombine.high %v945_v49, %v949_v51  ;;  %v3785_v58 = vcombine.low %v945_v49, %v949_v51 }
 0x11a   : > { %2207 = vmatprep.subr.bf16.mxu0 %v3642_v43  ;;  %v885_v37 = vld [vmem:[#allocation4 + $0x3f0] sm:$0xff] }
 0x11b   : > { %v937_v43 = vld [vmem:[#allocation4 + $0x590] sm:$0xff]  ;;  %v3722_v56 = vcombine.high %v881_v36, %v885_v37  ;;  %v3721_v4 = vcombine.low %v881_v36, %v885_v37 }
 0x11c   : > { %2078 = vmatpush2.bf16.msra.mxu1 %v3703_v50  ;;  %2173 = vmatmul.mubr.bf16.gmra.mxu0 %v4384_v34  ;;  %v941_v50 = vld [vmem:[#allocation4 + $0x5b0] sm:$0xff] }
 0x11d   : > { %2079 = vmatprep.subr.bf16.mxu1 %v3696_v60  ;;  %2208 = vmatpush1.bf16.msra.mxu0 %v3641_v62  ;;  %v873_v60 = vld [vmem:[#allocation4 + $0x390] sm:$0xff]  ;;  %v3778_v2 = vcombine.high %v937_v43, %v941_v50  ;;  %v3777_v63 = vcombine.low %v937_v43, %v941_v50 }
 0x11e   : > { %2182 = vmatprep.mubr.bf16.mxu0 %v4097_v0  ;;  %2209 = vmatprep.subr.bf16.mxu0 %v3634_v5  ;;  %v877_v62 = vld [vmem:[#allocation4 + $0x3b0] sm:$0xff] }
 0x11f   : > { %v929_v5 = vld [vmem:[#allocation4 + $0x550] sm:$0xff]  ;;  %v3714_v7 = vcombine.high %v873_v60, %v877_v62  ;;  %v3713_v11 = vcombine.low %v873_v60, %v877_v62 }
 0x120   : > { %2080 = vmatpush2.bf16.msra.mxu1 %v3695_v6  ;;  %v933_v6 = vld [vmem:[#allocation4 + $0x570] sm:$0xff] }
 0x121   : > { %2081 = vmatprep.subr.bf16.mxu1 %v3688_v8  ;;  %2210 = vmatpush1.bf16.msra.mxu0 %v3633_v9  ;;  %v865_v8 = vld [vmem:[#allocation4 + $0x350] sm:$0xff]  ;;  %v3770_v20 = vcombine.high %v929_v5, %v933_v6  ;;  %v3769_v14 = vcombine.low %v929_v5, %v933_v6 }
 0x122   : > { %2211 = vmatprep.subr.bf16.mxu0 %v3626_v12  ;;  %v869_v9 = vld [vmem:[#allocation4 + $0x370] sm:$0xff] }
 0x123   : > { %v921_v12 = vld [vmem:[#allocation4 + $0x510] sm:$0xff]  ;;  %v3706_v3 = vcombine.high %v865_v8, %v869_v9  ;;  %v3705_v18 = vcombine.low %v865_v8, %v869_v9 }
 0x124   : > { %2082 = vmatpush2.bf16.msra.mxu1 %v3687_v13  ;;  %2183 = vmatmul.mubr.bf16.gmra.mxu0 %v4418_v45  ;;  %v925_v13 = vld [vmem:[#allocation4 + $0x530] sm:$0xff] }
 0x125   : > { %2083 = vmatprep.subr.bf16.mxu1 %v3680_v15  ;;  %2212 = vmatpush1.bf16.msra.mxu0 %v3625_v16  ;;  %v857_v15 = vld [vmem:[#allocation4 + $0x310] sm:$0xff]  ;;  %v3762_v17 = vcombine.high %v921_v12, %v925_v13  ;;  %v3761_v47 = vcombine.low %v921_v12, %v925_v13 }
 0x126   : > { %2192 = vmatprep.mubr.bf16.mxu0 %v4097_v0  ;;  %2213 = vmatprep.subr.bf16.mxu0 %v3618_v19  ;;  %v861_v16 = vld [vmem:[#allocation4 + $0x330] sm:$0xff] }
 0x127   : > { %v913_v19 = vld [vmem:[#allocation4 + $0x4d0] sm:$0xff]  ;;  %v3698_v44 = vcombine.high %v857_v15, %v861_v16  ;;  %v3697_v25 = vcombine.low %v857_v15, %v861_v16 }
 0x128   : > { %2084 = vmatpush2.bf16.msra.mxu1 %v3679_v21  ;;  %v917_v21 = vld [vmem:[#allocation4 + $0x4f0] sm:$0xff] }
 0x129   : > { %2085 = vmatprep.subr.bf16.mxu1 %v3672_v22  ;;  %2214 = vmatpush1.bf16.msra.mxu0 %v3617_v23  ;;  %v849_v22 = vld [vmem:[#allocation4 + $0x2d0] sm:$0xff]  ;;  %v3754_v24 = vcombine.high %v913_v19, %v917_v21  ;;  %v3753_v30 = vcombine.low %v913_v19, %v917_v21 }
 0x12a   : > { %2215 = vmatprep.subr.bf16.mxu0 %v3610_v26  ;;  %v853_v23 = vld [vmem:[#allocation4 + $0x2f0] sm:$0xff] }
 0x12b   : > { %v905_v26 = vld [vmem:[#allocation4 + $0x490] sm:$0xff]  ;;  %v3690_v29 = vcombine.high %v849_v22, %v853_v23  ;;  %v3689_v51 = vcombine.low %v849_v22, %v853_v23 }
 0x12c   : > { %2086 = vmatpush2.bf16.msra.mxu1 %v3671_v27  ;;  %2193 = vmatmul.mubr.bf16.gmra.mxu0 %v4436_v61  ;;  %v909_v27 = vld [vmem:[#allocation4 + $0x4b0] sm:$0xff] }
 0x12d   : > { %2087 = vmatprep.subr.bf16.mxu1 %v3664_v10  ;;  %2216 = vmatpush1.bf16.msra.mxu0 %v3609_v48  ;;  %v841_v10 = vld [vmem:[#allocation4 + $0x290] sm:$0xff]  ;;  %v3746_v49 = vcombine.high %v905_v26, %v909_v27  ;;  %v3745_v37 = vcombine.low %v905_v26, %v909_v27 }
 0x12e   : > { %2235 = vmatprep.mubr.bf16.mxu0 %v4330_v59  ;;  %2217 = vmatprep.subr.bf16.mxu0 %v3602_v32  ;;  %v845_v48 = vld [vmem:[#allocation4 + $0x2b0] sm:$0xff] }
 0x12f   : > { %v897_v32 = vld [vmem:[#allocation4 + $0x450] sm:$0xff]  ;;  %v3682_v36 = vcombine.high %v841_v10, %v845_v48  ;;  %v3681_v50 = vcombine.low %v841_v10, %v845_v48 }
 0x130   : > { %2088 = vmatpush2.bf16.msra.mxu1 %v3663_v33  ;;  %v901_v33 = vld [vmem:[#allocation4 + $0x470] sm:$0xff] }
 0x131   : > { %2276 = vmatprep.subr.bf16.mxu1 %v3786_v38  ;;  %2218 = vmatpush1.bf16.msra.mxu0 %v3601_v40  ;;  %v833_v38 = vld [vmem:[#allocation4 + $0x250] sm:$0xff]  ;;  %v3738_v43 = vcombine.high %v897_v32, %v901_v33  ;;  %v3737_v62 = vcombine.low %v897_v32, %v901_v33 }
 0x132   : > { %2219 = vmatprep.subr.bf16.mxu0 %v3722_v56  ;;  %v837_v40 = vld [vmem:[#allocation4 + $0x270] sm:$0xff] }
 0x133   : > { %2090 = vmatmul.mubr.bf16.vlgmr.msra.gmra.mxu1 %v4324_v42  ;;  %v889_v56 = vld [vmem:[#allocation4 + $0x410] sm:$0xff]  ;;  %v3674_v60 = vcombine.high %v833_v38, %v837_v40  ;;  %v3673_v6 = vcombine.low %v833_v38, %v837_v40 }
 0x134   : > { %2099 = vmatprep.mubr.bf16.mxu1 %v4391_v39  ;;  %2277 = vmatpush1.bf16.msra.mxu1 %v3785_v58  ;;  %v893_v58 = vld [vmem:[#allocation4 + $0x430] sm:$0xff] }
 0x135   : > { %2278 = vmatprep.subr.bf16.mxu1 %v3778_v2  ;;  %2220 = vmatpush2.bf16.msra.mxu0 %v3721_v4  ;;  %v825_v2 = vld [vmem:[#allocation4 + $0x210] sm:$0xff]  ;;  %v3730_v5 = vcombine.high %v889_v56, %v893_v58  ;;  %v3729_v9 = vcombine.low %v889_v56, %v893_v58 }
 0x136   : > { %2221 = vmatprep.subr.bf16.mxu0 %v3714_v7  ;;  %v829_v4 = vld [vmem:[#allocation4 + $0x230] sm:$0xff]  ;;  %v818_v7 = vld [vmem:[#allocation4 + $0x1d8] sm:$0xff] }
 0x137   : > { %v3666_v8 = vcombine.high %v825_v2, %v829_v4  ;;  %v3665_v13 = vcombine.low %v825_v2, %v829_v4 }
 0x138   : > { %2279 = vmatpush1.bf16.msra.mxu1 %v3777_v63  ;;  %v822_v63 = vld [vmem:[#allocation4 + $0x1f8] sm:$0xff] }
 0x139   : > { %2280 = vmatprep.subr.bf16.mxu1 %v3770_v20  ;;  %2222 = vmatpush2.bf16.msra.mxu0 %v3713_v11  ;;  %v946_v20 = vld [vmem:[#allocation4 + $0x5d8] sm:$0xff]  ;;  %v3660_v12 = vcombine.high %v818_v7, %v822_v63  ;;  %v3659_v16 = vcombine.low %v818_v7, %v822_v63 }
 0x13a   : > { %2223 = vmatprep.subr.bf16.mxu0 %v3706_v3  ;;  %v950_v11 = vld [vmem:[#allocation4 + $0x5f8] sm:$0xff] }
 0x13b   : > { %2100 = vmatmul.mubr.bf16.gmra.mxu1 %v4386_v35  ;;  %v810_v3 = vld [vmem:[#allocation4 + $0x198] sm:$0xff]  ;;  %v3788_v15 = vcombine.high %v946_v20, %v950_v11  ;;  %v3787_v21 = vcombine.low %v946_v20, %v950_v11 }
 0x13c   : > { %2109 = vmatprep.mubr.bf16.mxu1 %v4425_v31  ;;  %2281 = vmatpush1.bf16.msra.mxu1 %v3769_v14  ;;  %v814_v14 = vld [vmem:[#allocation4 + $0x1b8] sm:$0xff] }
 0x13d   : > { %2282 = vmatprep.subr.bf16.mxu1 %v3762_v17  ;;  %2224 = vmatpush2.bf16.msra.mxu0 %v3705_v18  ;;  %v938_v17 = vld [vmem:[#allocation4 + $0x598] sm:$0xff]  ;;  %v3652_v19 = vcombine.high %v810_v3, %v814_v14  ;;  %v3651_v23 = vcombine.low %v810_v3, %v814_v14 }
 0x13e   : > { %2225 = vmatprep.subr.bf16.mxu0 %v3698_v44  ;;  %v942_v18 = vld [vmem:[#allocation4 + $0x5b8] sm:$0xff] }
 0x13f   : > { %v802_v44 = vld [vmem:[#allocation4 + $0x158] sm:$0xff]  ;;  %v3780_v22 = vcombine.high %v938_v17, %v942_v18  ;;  %v3779_v27 = vcombine.low %v938_v17, %v942_v18 }
 0x140   : > { %2283 = vmatpush1.bf16.msra.mxu1 %v3761_v47  ;;  %v806_v47 = vld [vmem:[#allocation4 + $0x178] sm:$0xff] }
 0x141   : > { %2284 = vmatprep.subr.bf16.mxu1 %v3754_v24  ;;  %2226 = vmatpush2.bf16.msra.mxu0 %v3697_v25  ;;  %v930_v24 = vld [vmem:[#allocation4 + $0x558] sm:$0xff]  ;;  %v3644_v26 = vcombine.high %v802_v44, %v806_v47  ;;  %v3643_v48 = vcombine.low %v802_v44, %v806_v47 }
 0x142   : > { %2227 = vmatprep.subr.bf16.mxu0 %v3690_v29  ;;  %v934_v25 = vld [vmem:[#allocation4 + $0x578] sm:$0xff] }
 0x143   : > { %2110 = vmatmul.mubr.bf16.gmra.mxu1 %v4422_v28  ;;  %v794_v29 = vld [vmem:[#allocation4 + $0x118] sm:$0xff]  ;;  %v3772_v10 = vcombine.high %v930_v24, %v934_v25  ;;  %v3771_v33 = vcombine.low %v930_v24, %v934_v25 }
 0x144   : > { %2119 = vmatprep.mubr.bf16.mxu1 %v4440_v41  ;;  %2285 = vmatpush1.bf16.msra.mxu1 %v3753_v30  ;;  %v798_v30 = vld [vmem:[#allocation4 + $0x138] sm:$0xff] }
 0x145   : > { %2286 = vmatprep.subr.bf16.mxu1 %v3746_v49  ;;  %2228 = vmatpush2.bf16.msra.mxu0 %v3689_v51  ;;  %v922_v49 = vld [vmem:[#allocation4 + $0x518] sm:$0xff]  ;;  %v3636_v32 = vcombine.high %v794_v29, %v798_v30  ;;  %v3635_v40 = vcombine.low %v794_v29, %v798_v30 }
 0x146   : > { %2229 = vmatprep.subr.bf16.mxu0 %v3682_v36  ;;  %v926_v51 = vld [vmem:[#allocation4 + $0x538] sm:$0xff] }
 0x147   : > { %v786_v36 = vld [vmem:[#allocation4 + $0xd8] sm:$0xff]  ;;  %v3764_v38 = vcombine.high %v922_v49, %v926_v51  ;;  %v3763_v58 = vcombine.low %v922_v49, %v926_v51 }
 0x148   : > { %2287 = vmatpush1.bf16.msra.mxu1 %v3745_v37  ;;  %v790_v37 = vld [vmem:[#allocation4 + $0xf8] sm:$0xff] }
 0x149   : > { %2288 = vmatprep.subr.bf16.mxu1 %v3738_v43  ;;  %2230 = vmatpush2.bf16.msra.mxu0 %v3681_v50  ;;  %v914_v43 = vld [vmem:[#allocation4 + $0x4d8] sm:$0xff]  ;;  %v3628_v56 = vcombine.high %v786_v36, %v790_v37  ;;  %v3627_v4 = vcombine.low %v786_v36, %v790_v37 }
 0x14a   : > { %2231 = vmatprep.subr.bf16.mxu0 %v3674_v60  ;;  %v918_v50 = vld [vmem:[#allocation4 + $0x4f8] sm:$0xff] }
 0x14b   : > { %2120 = vmatmul.mubr.bf16.gmra.mxu1 %v4438_v1  ;;  %v778_v60 = vld [vmem:[#allocation4 + $0x98] sm:$0xff]  ;;  %v3756_v2 = vcombine.high %v914_v43, %v918_v50  ;;  %v3755_v63 = vcombine.low %v914_v43, %v918_v50  ;;  %v3995_v43 = vld [vmem:[%s4934_s5 + $0x30] sm:$0xff]   ;;  %v3996_v50 = vld [vmem:[%s4934_s5 + $0x68] sm:$0xff]  }
 0x14c   : > { %2289 = vmatpush1.bf16.msra.mxu1 %v3737_v62  ;;  %2308 = vmatprep.mubr.bf16.mxu1 %v4097_v0  ;;  %v782_v62 = vld [vmem:[#allocation4 + $0xb8] sm:$0xff] }
 0x14d   : > { %2290 = vmatprep.subr.bf16.mxu1 %v3730_v5  ;;  %2232 = vmatpush2.bf16.msra.mxu0 %v3673_v6  ;;  %v906_v5 = vld [vmem:[#allocation4 + $0x498] sm:$0xff]  ;;  %v3620_v7 = vcombine.high %v778_v60, %v782_v62  ;;  %v3619_v11 = vcombine.low %v778_v60, %v782_v62  ;;  %v3997_v62 = vld [vmem:[%s4934_s5 + $0x28] sm:$0xff]  }
 0x14e   : > { %2233 = vmatprep.subr.bf16.mxu0 %v3666_v8  ;;  %v910_v6 = vld [vmem:[#allocation4 + $0x4b8] sm:$0xff] }
 0x14f   : > { %v770_v8 = vld [vmem:[#allocation4 + $0x58] sm:$0xff]  ;;  %v3748_v20 = vcombine.high %v906_v5, %v910_v6  ;;  %v3747_v14 = vcombine.low %v906_v5, %v910_v6 }
 0x150   : > { %2291 = vmatpush1.bf16.msra.mxu1 %v3729_v9  ;;  %v774_v9 = vld [vmem:[#allocation4 + $0x78] sm:$0xff] }
 0x151   : > { %2349 = vmatprep.subr.bf16.mxu1 %v3660_v12  ;;  %2234 = vmatpush2.bf16.msra.mxu0 %v3665_v13  ;;  %v898_v12 = vld [vmem:[#allocation4 + $0x458] sm:$0xff]  ;;  %v3612_v3 = vcombine.high %v770_v8, %v774_v9  ;;  %v3611_v18 = vcombine.low %v770_v8, %v774_v9 }
 0x152   : > { %2422 = vmatprep.subr.bf16.mxu0 %v3788_v15  ;;  %v902_v13 = vld [vmem:[#allocation4 + $0x478] sm:$0xff] }
 0x153   : > { %2309 = vmatmul.mubr.bf16.vlgmr.msra.gmra.mxu1 %v4327_v46  ;;  %v762_v15 = vld [vmem:[#allocation4 + $0x18] sm:$0xff]  ;;  %v3740_v17 = vcombine.high %v898_v12, %v902_v13  ;;  %v3739_v47 = vcombine.low %v898_v12, %v902_v13  ;;  %v4002_v13 = vld [vmem:[%s4934_s5 + $0x50] sm:$0xff]  }
 0x154   : > { %2350 = vmatpush1.bf16.msra.mxu1 %v3659_v16  ;;  %2318 = vmatprep.mubr.bf16.mxu1 %v4097_v0  ;;  %v766_v16 = vld [vmem:[#allocation4 + $0x38] sm:$0xff] }
 0x155   : > { %2236 = vmatmul.mubr.bf16.vlgmr.msra.gmra.mxu0 %v4324_v42  ;;  %2351 = vmatprep.subr.bf16.mxu1 %v3652_v19  ;;  %v890_v19 = vld [vmem:[#allocation4 + $0x418] sm:$0xff]  ;;  %v3604_v44 = vcombine.high %v762_v15, %v766_v16  ;;  %v3603_v25 = vcombine.low %v762_v15, %v766_v16 }
 0x156   : > { %2245 = vmatprep.mubr.bf16.mxu0 %v4391_v39  ;;  %2423 = vmatpush1.bf16.msra.mxu0 %v3787_v21  ;;  %v894_v21 = vld [vmem:[#allocation4 + $0x438] sm:$0xff] }
 0x157   : > { %2424 = vmatprep.subr.bf16.mxu0 %v3780_v22  ;;  %v882_v22 = vld [vmem:[#allocation4 + $0x3d8] sm:$0xff]  ;;  %v3732_v24 = vcombine.high %v890_v19, %v894_v21 }
 0x158   : > { %2352 = vmatpush1.bf16.msra.mxu1 %v3651_v23  ;;  %v886_v23 = vld [vmem:[#allocation4 + $0x3f8] sm:$0xff] }
 0x159   : > { %2353 = vmatprep.subr.bf16.mxu1 %v3644_v26  ;;  %v3724_v26 = vcombine.high %v882_v22, %v886_v23  ;;  %v874_v29 = vld [vmem:[#allocation4 + $0x398] sm:$0xff] }
 0x15a   : > { %2425 = vmatpush1.bf16.msra.mxu0 %v3779_v27  ;;  %v3731_v27 = vcombine.low %v890_v19, %v894_v21  ;;  %v878_v30 = vld [vmem:[#allocation4 + $0x3b8] sm:$0xff]  ;;  %v4006_v21 = vld [vmem:[%s4934_s5 + $0x40] sm:$0xff]  }
 0x15b   : > { %2319 = vmatmul.mubr.bf16.gmra.mxu1 %v4384_v34  ;;  %2426 = vmatprep.subr.bf16.mxu0 %v3772_v10  ;;  %v3992_v10 = vld [vmem:[%s4934_s5 + $0x78] sm:$0xff]   ;;  %v3715_v36 = vcombine.low %v874_v29, %v878_v30 }
 0x15c   : > { %2354 = vmatpush1.bf16.msra.mxu1 %v3643_v48  ;;  %2328 = vmatprep.mubr.bf16.mxu1 %v4097_v0  ;;  %v3723_v48 = vcombine.low %v882_v22, %v886_v23  ;;  %v866_v49 = vld [vmem:[#allocation4 + $0x358] sm:$0xff]  ;;  %v4007_v22 = vld [vmem:[%s4934_s5] sm:$0xff]  }
 0x15d   : > { %2246 = vmatmul.mubr.bf16.gmra.mxu0 %v4386_v35  ;;  %2355 = vmatprep.subr.bf16.mxu1 %v3636_v32  ;;  %v870_v51 = vld [vmem:[#allocation4 + $0x378] sm:$0xff] }
 0x15e   : > { %2255 = vmatprep.mubr.bf16.mxu0 %v4425_v31  ;;  %2427 = vmatpush1.bf16.msra.mxu0 %v3771_v33  ;;  %v3993_v32 = vld [vmem:[%s4934_s5 + $0x38] sm:$0xff]   ;;  %v3994_v33 = vld [vmem:[%s4934_s5 + $0x70] sm:$0xff]   ;;  %v3708_v37 = vcombine.high %v866_v49, %v870_v51 }
 0x15f   : > { %2428 = vmatprep.subr.bf16.mxu0 %v3764_v38  ;;  %v858_v38 = vld [vmem:[#allocation4 + $0x318] sm:$0xff] }
 0x160   : > { %2356 = vmatpush1.bf16.msra.mxu1 %v3635_v40  ;;  %v862_v40 = vld [vmem:[#allocation4 + $0x338] sm:$0xff] }
 0x161   : > { %2357 = vmatprep.subr.bf16.mxu1 %v3628_v56  ;;  %v3707_v56 = vcombine.low %v866_v49, %v870_v51  ;;  %v854_v60 = vld [vmem:[#allocation4 + $0x2f8] sm:$0xff] }
 0x162   : > { %2429 = vmatpush1.bf16.msra.mxu0 %v3763_v58  ;;  %v850_v58 = vld [vmem:[#allocation4 + $0x2d8] sm:$0xff] }
 0x163   : > { %2329 = vmatmul.mubr.bf16.gmra.mxu1 %v4418_v45  ;;  %2430 = vmatprep.subr.bf16.mxu0 %v3756_v2  ;;  %v3998_v2 = vld [vmem:[%s4934_s5 + $0x60] sm:$0xff]   ;;  %v3692_v5 = vcombine.high %v850_v58, %v854_v60  ;;  %v842_v6 = vld [vmem:[#allocation4 + $0x298] sm:$0xff]  ;;  %v3691_v9 = vcombine.low %v850_v58, %v854_v60 }
 0x164   : > { %2358 = vmatpush1.bf16.msra.mxu1 %v3627_v4  ;;  %2338 = vmatprep.mubr.bf16.mxu1 %v4097_v0  ;;  %v3699_v4 = vcombine.low %v858_v38, %v862_v40  ;;  %v4000_v8 = vld [vmem:[%s4934_s5 + $0x58] sm:$0xff]  }
 0x165   : > { %2256 = vmatmul.mubr.bf16.gmra.mxu0 %v4422_v28  ;;  %2359 = vmatprep.subr.bf16.mxu1 %v3620_v7  ;;  %v846_v7 = vld [vmem:[#allocation4 + $0x2b8] sm:$0xff] }
 0x166   : > { %2265 = vmatprep.mubr.bf16.mxu0 %v4440_v41  ;;  %2431 = vmatpush1.bf16.msra.mxu0 %v3755_v63  ;;  %v3999_v63 = vld [vmem:[%s4934_s5 + $0x20] sm:$0xff]   ;;  %v4001_v12 = vld [vmem:[%s4934_s5 + $0x18] sm:$0xff]  }
 0x167   : > { %2432 = vmatprep.subr.bf16.mxu0 %v3748_v20  ;;  %v834_v20 = vld [vmem:[#allocation4 + $0x258] sm:$0xff] }
 0x168   : > { %2360 = vmatpush1.bf16.msra.mxu1 %v3619_v11  ;;  %v838_v11 = vld [vmem:[#allocation4 + $0x278] sm:$0xff] }
 0x169   : > { %2361 = vmatprep.subr.bf16.mxu1 %v3612_v3  ;;  %v3683_v3 = vcombine.low %v842_v6, %v846_v7  ;;  %v826_v15 = vld [vmem:[#allocation4 + $0x218] sm:$0xff]  ;;  %v3675_v19 = vcombine.low %v834_v20, %v838_v11 }
 0x16a   : > { %2433 = vmatpush1.bf16.msra.mxu0 %v3747_v14  ;;  %v3676_v14 = vcombine.high %v834_v20, %v838_v11  ;;  %v830_v16 = vld [vmem:[#allocation4 + $0x238] sm:$0xff] }
 0x16b   : > { %2339 = vmatmul.mubr.bf16.gmra.mxu1 %v4436_v61  ;;  %2434 = vmatprep.subr.bf16.mxu0 %v3740_v17  ;;  %v4003_v17 = vld [vmem:[%s4934_s5 + $0x10] sm:$0xff]   ;;  %v4009_v23 = vld [vmem:[%s4934_s5 + $0xb8] sm:$0xff]  }
 0x16c   : > { %2362 = vmatpush1.bf16.msra.mxu1 %v3611_v18  ;;  %2381 = vmatprep.mubr.bf16.mxu1 %v4330_v59  ;;  %v3716_v59 = vcombine.high %v874_v29, %v878_v30  ;;  %v4004_v18 = vld [vmem:[%s4934_s5 + $0x48] sm:$0xff]   ;;  %v4017_v29 = vld [vmem:[%s4934_s5 + $0x98] sm:$0xff]  }
 0x16d   : > { %2266 = vmatmul.mubr.bf16.gmra.mxu0 %v4438_v1  ;;  %2363 = vmatprep.subr.bf16.mxu1 %v3604_v44  ;;  %v3667_v44 = vcombine.low %v826_v15, %v830_v16  ;;  %v4020_v30 = vld [vmem:[%s4934_s5 + $0xc8] sm:$0xff]  }
 0x16e   : > { %2435 = vmatpush1.bf16.msra.mxu0 %v3739_v47  ;;  %2454 = vmatprep.mubr.bf16.mxu0 %v4097_v0  ;;  %v4008_v47 = vld [vmem:[%s4934_s5 + $0xf8] sm:$0xff]  }
 0x16f   : > { %2436 = vmatprep.subr.bf16.mxu0 %v3732_v24  ;;  %v4011_v24 = vld [vmem:[%s4934_s5 + $0xb0] sm:$0xff]  }
 0x170   : > { %2364 = vmatpush1.bf16.msra.mxu1 %v3603_v25  ;;  %v4012_v25 = vld [vmem:[%s4934_s5 + $0xe8] sm:$0xff]  }
 0x171   : > { %2365 = vmatprep.subr.bf16.mxu1 %v3724_v26  ;;  %v4013_v26 = vld [vmem:[%s4934_s5 + $0xa8] sm:$0xff]  }
 0x172   : > { %2437 = vmatpush1.bf16.msra.mxu0 %v3731_v27  ;;  %v4016_v27 = vld [vmem:[%s4934_s5 + $0xd8] sm:$0xff]  }
 0x173   : > { %3846 = vmatprep.subr.bf16.mxu0 %v3992_v10  ;;  %v4021_v10 = vld [vmem:[%s4934_s5 + $0x88] sm:$0xff]  }
 0x174   : > { %2366 = vmatpush2.bf16.msra.mxu1 %v3723_v48  ;;  %v4024_v48 = vld [vmem:[%s4936_s7 + $0x78] sm:$0xff]  }
 0x175   : > { %2455 = vmatmul.mubr.bf16.vlgmr.msra.gmra.mxu0 %v4327_v46  ;;  %2367 = vmatprep.subr.bf16.mxu1 %v3716_v59  ;;  %v3700_v46 = vcombine.high %v858_v38, %v862_v40  ;;  %v4595_v40 = vld [vmem:[%s4933_s4] ss:$2 sm:$0xff] }
 0x176   : > { %2464 = vmatprep.mubr.bf16.mxu0 %v4097_v0  ;;  %3847 = vmatpush3.bf16.msra.mxu0 %v3993_v32 }
 0x177   : > { %3848 = vmatprep.subr.bf16.mxu0 %v3994_v33 }
 0x178   : > { %2368 = vmatpush2.bf16.msra.mxu1 %v3715_v36 }
 0x179   : > { %2369 = vmatprep.subr.bf16.mxu1 %v3708_v37 }
 0x17a   : > { %3849 = vmatpush3.bf16.msra.mxu0 %v3995_v43 }
 0x17b   : > { %3850 = vmatprep.subr.bf16.mxu0 %v3996_v50 }
 0x17c   : > { %2370 = vmatpush2.bf16.msra.mxu1 %v3707_v56 }
 0x17d   : > { %2465 = vmatmul.mubr.bf16.gmra.mxu0 %v4384_v34  ;;  %2371 = vmatprep.subr.bf16.mxu1 %v3700_v46  ;;  %v3684_v34 = vcombine.high %v842_v6, %v846_v7 }
 0x17e   : > { %2474 = vmatprep.mubr.bf16.mxu0 %v4097_v0  ;;  %3851 = vmatpush3.bf16.msra.mxu0 %v3997_v62  ;;  %v4599_v62 = vrot.slane %v4595_v40, %v4262_v54 }
 0x17f   : > { %3852 = vmatprep.subr.bf16.mxu0 %v3998_v2  ;;  %v4604_v2 = vld [vmem:[%s4933_s4 + $0x1] ss:$2 sm:$0xff] }
 0x180   : > { %2372 = vmatpush2.bf16.msra.mxu1 %v3699_v4 }
 0x181   : > { %2373 = vmatprep.subr.bf16.mxu1 %v3692_v5 }
 0x182   : > { %3853 = vmatpush3.bf16.msra.mxu0 %v3999_v63 }
 0x183   : > { %3854 = vmatprep.subr.bf16.mxu0 %v4000_v8  ;;  %v4608_v8 = vrot.slane %v4595_v40, %v4265_v55 }
 0x184   : > { %2374 = vmatpush2.bf16.msra.mxu1 %v3691_v9 }
 0x185   : > { %2475 = vmatmul.mubr.bf16.gmra.mxu0 %v4418_v45  ;;  %2375 = vmatprep.subr.bf16.mxu1 %v3684_v34  ;;  %v3668_v45 = vcombine.high %v826_v15, %v830_v16 }
 0x186   : > { %2484 = vmatprep.mubr.bf16.mxu0 %v4097_v0  ;;  %3855 = vmatpush3.bf16.msra.mxu0 %v4001_v12  ;;  %v4005_v0 = vld [vmem:[%s4934_s5 + $0x8] sm:$0xff]  }
 0x187   : > { %3856 = vmatprep.subr.bf16.mxu0 %v4002_v13 }
 0x188   : > { %2376 = vmatpush2.bf16.msra.mxu1 %v3683_v3  ;;  %v4614_v3 = vrot.slane %v4604_v2, %v4262_v54 }
 0x189   : > { %2377 = vmatprep.subr.bf16.mxu1 %v3676_v14 }
 0x18a   : > { %3857 = vmatpush3.bf16.msra.mxu0 %v4003_v17 }
 0x18b   : > { %3858 = vmatprep.subr.bf16.mxu0 %v4004_v18 }
 0x18c   : > { %2378 = vmatpush2.bf16.msra.mxu1 %v3675_v19 }
 0x18d   : > { %2485 = vmatmul.mubr.bf16.gmra.mxu0 %v4436_v61  ;;  %2379 = vmatprep.subr.bf16.mxu1 %v3668_v45  ;;  %v4010_v61 = vld [vmem:[%s4934_s5 + $0xf0] sm:$0xff]   ;;  %v2611_v45 = vrot.slane %v4604_v2, %v4265_v55 }
 0x18e   : > { %3859 = vmatpush3.bf16.msra.mxu0 %v4005_v0 }
 0x18f   : > { %3860 = vmatprep.subr.bf16.mxu0 %v4006_v21 }
 0x190   : > { %2380 = vmatpush2.bf16.msra.mxu1 %v3667_v44 }
 0x191   : > { %3868 = vmatprep.subr.bf16.mxu1 %v4008_v47 }
 0x192   : > { %3861 = vmatpush3.bf16.msra.mxu0 %v4007_v22 }
 0x193   : > { %2382 = vmatmul.mubr.bf16.vlgmr.msra.gmra.mxu1 %v4324_v42  ;;  %v4014_v42 = vld [vmem:[%s4934_s5 + $0xe0] sm:$0xff]   ;;  %3890 = vmatprep.subr.bf16.mxu0 %v4024_v48 }
 0x194   : > { %2391 = vmatprep.mubr.bf16.mxu1 %v4391_v39  ;;  %3869 = vmatpush3.bf16.msra.mxu1 %v4009_v23  ;;  %v4015_v39 = vld [vmem:[%s4934_s5 + $0xa0] sm:$0xff]  }
 0x195   : > { %3870 = vmatprep.subr.bf16.mxu1 %v4010_v61 }
 0x198   : > { %3871 = vmatpush3.bf16.msra.mxu1 %v4011_v24 }
 0x199   : > { %3872 = vmatprep.subr.bf16.mxu1 %v4012_v25 }
 0x19b   : > { %2392 = vmatmul.mubr.bf16.gmra.mxu1 %v4386_v35  ;;  %v4018_v35 = vld [vmem:[%s4934_s5 + $0xd0] sm:$0xff]  }
 0x19c   : > { %2401 = vmatprep.mubr.bf16.mxu1 %v4425_v31  ;;  %3873 = vmatpush3.bf16.msra.mxu1 %v4013_v26  ;;  %v4019_v31 = vld [vmem:[%s4934_s5 + $0x90] sm:$0xff]  }
 0x19d   : > { %3874 = vmatprep.subr.bf16.mxu1 %v4014_v42 }
 0x1a0   : > { %3875 = vmatpush3.bf16.msra.mxu1 %v4015_v39 }
 0x1a1   : > { %3876 = vmatprep.subr.bf16.mxu1 %v4016_v27 }
 0x1a3   : > { %2402 = vmatmul.mubr.bf16.gmra.mxu1 %v4422_v28  ;;  %v4022_v28 = vld [vmem:[%s4934_s5 + $0xc0] sm:$0xff]  }
 0x1a4   : > { %2411 = vmatprep.mubr.bf16.mxu1 %v4440_v41  ;;  %3877 = vmatpush3.bf16.msra.mxu1 %v4017_v29  ;;  %v4023_v41 = vld [vmem:[%s4934_s5 + $0x80] sm:$0xff]  }
 0x1a5   : > { %3878 = vmatprep.subr.bf16.mxu1 %v4018_v35 }
 0x1a8   : > { %3879 = vmatpush3.bf16.msra.mxu1 %v4019_v31 }
 0x1a9   : > { %3880 = vmatprep.subr.bf16.mxu1 %v4020_v30 }
 0x1ab   : > { %2412 = vmatmul.mubr.bf16.gmra.mxu1 %v4438_v1 }
 0x1ac   : > { %3881 = vmatpush3.bf16.msra.mxu1 %v4021_v10 }
 0x1ad   : > { %3882 = vmatprep.subr.bf16.mxu1 %v4022_v28 }
 0x1b0   : > { %3883 = vmatpush3.bf16.msra.mxu1 %v4023_v41 }
 0x1b1   : > { %3912 = vmatprep.subr.bf16.mxu1 %v4024_v48 }
 0x1b3   : > { %v2018_v59 = vpop.f32.mrf.mxu1 }
 0x1b4   : > { %v1945_v49 = vpop.f32.mrf.mxu0 }
 0x1b5   : > { %v2020_v51 = vpop.f32.mrf.mxu1  ;;  %v2019_v60 = vadd.f32 %v2018_v59, %v1945_v49 }
 0x1b6   : > { %v1947_v32 = vpop.f32.mrf.mxu0 }
 0x1b7   : > { %v2022_v33 = vpop.f32.mrf.mxu1  ;;  %v2021_v63 = vadd.f32 %v2020_v51, %v1947_v32  ;;  %v2537_v13 = vmul.f32 %v4599_v62, %v2019_v60 }
 0x1b8   : > { %v1949_v36 = vpop.f32.mrf.mxu0 }
 0x1b9   : > { %v2024_v1 = vpop.f32.mrf.mxu1  ;;  %v2023_v56 = vadd.f32 %v2022_v33, %v1949_v36  ;;  %v2538_v19 = vmul.f32 %v4608_v8, %v2021_v63  ;;  %v2644_v23 = vadd.f32 %v4614_v3, %v2537_v13 }
 0x1ba   : > { %v1951_v37 = vpop.f32.mrf.mxu0 }
 0x1bb   : > { %v2028_v38 = vpop.f32.mrf.mxu1  ;;  %v2025_v4 = vadd.f32 %v2024_v1, %v1951_v37  ;;  %v2545_v9 = vmul.f32 %v4599_v62, %v2023_v56  ;;  %v2645_v27 = vadd.f32 %v2611_v45, %v2538_v19 }
 0x1bc   : > { %v1955_v43 = vpop.f32.mrf.mxu0 }
 0x1bd   : > { %v2030_v50 = vpop.f32.mrf.mxu1  ;;  %v2029_v5 = vadd.f32 %v2028_v38, %v1955_v43  ;;  %v2546_v14 = vmul.f32 %v4608_v8, %v2025_v4  ;;  %v2652_v21 = vadd.f32 %v4614_v3, %v2545_v9 }
 0x1be   : > { %v1957_v46 = vpop.f32.mrf.mxu0 }
 0x1bf   : > { %v2032_v58 = vpop.f32.mrf.mxu1  ;;  %v2031_v34 = vadd.f32 %v2030_v50, %v1957_v46  ;;  %v2553_v15 = vmul.f32 %v4599_v62, %v2029_v5  ;;  %v2653_v24 = vadd.f32 %v2611_v45, %v2546_v14  ;;  %v2744_v35 = vmax.f32 %v2644_v23, %v2652_v21 }
 0x1c0   : > { %v1959_v6 = vpop.f32.mrf.mxu0 }
 0x1c1   : > { %v2034_v7 = vpop.f32.mrf.mxu1  ;;  %v2033_v20 = vadd.f32 %v2032_v58, %v1959_v6  ;;  %v2554_v44 = vmul.f32 %v4608_v8, %v2031_v34  ;;  %v2660_v25 = vadd.f32 %v4614_v3, %v2553_v15  ;;  %v2751_v49 = vmax.f32 %v2645_v27, %v2653_v24 }
 0x1c2   : > { %v1961_v11 = vpop.f32.mrf.mxu0 }
 0x1c3   : > { %v2038_v12 = vpop.f32.mrf.mxu1  ;;  %v2035_v16 = vadd.f32 %v2034_v7, %v1961_v11  ;;  %v2561_v54 = vmul.f32 %v4599_v62, %v2033_v20  ;;  %v2661_v31 = vadd.f32 %v2611_v45, %v2554_v44  ;;  %v2745_v51 = vmax.f32 %v2744_v35, %v2660_v25 }
 0x1c4   : > { %v1965_v17 = vpop.f32.mrf.mxu0 }
 0x1c5   : > { %v2040_v18 = vpop.f32.mrf.mxu1  ;;  %v2039_v0 = vadd.f32 %v2038_v12, %v1965_v17  ;;  %v2562_v26 = vmul.f32 %v4608_v8, %v2035_v16  ;;  %v2668_v30 = vadd.f32 %v4614_v3, %v2561_v54  ;;  %v2752_v43 = vmax.f32 %v2751_v49, %v2661_v31  ;;  %v4647_v49 = vld [vmem:[%s4936_s7 + $0x38] sm:$0xff]  }
 0x1c6   : > { %v1967_v47 = vpop.f32.mrf.mxu0 }
 0x1c7   : > { %v2042_v22 = vpop.f32.mrf.mxu1  ;;  %v2041_v61 = vadd.f32 %v2040_v18, %v1967_v47  ;;  %v2569_v42 = vmul.f32 %v4599_v62, %v2039_v0  ;;  %v2669_v32 = vadd.f32 %v2611_v45, %v2562_v26  ;;  %v2746_v50 = vmax.f32 %v2745_v51, %v2668_v30 }
 0x1c8   : > { %v1969_v55 = vpop.f32.mrf.mxu0 }
 0x1c9   : > { %v2044_v39 = vpop.f32.mrf.mxu1  ;;  %v2043_v29 = vadd.f32 %v2042_v22, %v1969_v55  ;;  %v2570_v10 = vmul.f32 %v4608_v8, %v2041_v61  ;;  %v2676_v33 = vadd.f32 %v4614_v3, %v2569_v42  ;;  %v2753_v6 = vmax.f32 %v2752_v43, %v2669_v32  ;;  %v4652_v32 = vld [vmem:[%s4936_s7 + $0x70] sm:$0xff]  }
 0x1ca   : > { %v1971_v28 = vpop.f32.mrf.mxu0 }
 0x1cb   : > { %v2048_v41 = vpop.f32.mrf.mxu1  ;;  %v2577_v48 = vmul.f32 %v4599_v62, %v2043_v29  ;;  %v2045_v59 = vadd.f32 %v2044_v39, %v1971_v28  ;;  %v2677_v56 = vadd.f32 %v2611_v45, %v2570_v10  ;;  %v2747_v7 = vmax.f32 %v2746_v50, %v2676_v33  ;;  %v4676_v50 = vld [vmem:[%s4936_s7 + $0x60] sm:$0xff]  }
 0x1cc   : > { %v1975_v36 = vpop.f32.mrf.mxu0 }
 0x1cd   : > { %v2050_v1 = vpop.f32.mrf.mxu1  ;;  %v2578_v37 = vmul.f32 %v4608_v8, %v2045_v59  ;;  %v2049_v38 = vadd.f32 %v2048_v41, %v1975_v36  ;;  %v2684_v60 = vadd.f32 %v4614_v3, %v2577_v48  ;;  %v2754_v13 = vmax.f32 %v2753_v6, %v2677_v56  ;;  %v4658_v36 = vld [vmem:[%s4936_s7 + $0x30] sm:$0xff]  }
 0x1ce   : > { %v1977_v46 = vpop.f32.mrf.mxu0 }
 0x1cf   : > { %v2052_v58 = vpop.f32.mrf.mxu1  ;;  %v2585_v4 = vmul.f32 %v4599_v62, %v2049_v38  ;;  %v2051_v5 = vadd.f32 %v2050_v1, %v1977_v46  ;;  %v2685_v34 = vadd.f32 %v2611_v45, %v2578_v37  ;;  %v2748_v15 = vmax.f32 %v2747_v7, %v2684_v60  ;;  %v4664_v1 = vld [vmem:[%s4936_s7 + $0x68] sm:$0xff]   ;;  %v4694_v7 = vld [vmem:[%s4936_s7 + $0x18] sm:$0xff]  }
 0x1d0   : > { %v1979_v63 = vpop.f32.mrf.mxu0  ;;  %v4670_v38 = vld [vmem:[%s4936_s7 + $0x28] sm:$0xff]  }
 0x1d1   : > { %v2054_v9 = vpop.f32.mrf.mxu1  ;;  %v2692_v20 = vadd.f32 %v4614_v3, %v2585_v4  ;;  %v2586_v11 = vmul.f32 %v4608_v8, %v2051_v5  ;;  %v2053_v12 = vadd.f32 %v2052_v58, %v1979_v63  ;;  %v2755_v0 = vmax.f32 %v2754_v13, %v2685_v34  ;;  %v4682_v58 = vld [vmem:[%s4936_s7 + $0x20] sm:$0xff]   ;;  %v4688_v4 = vld [vmem:[%s4936_s7 + $0x58] sm:$0xff]  }
 0x1d2   : > { %v1981_v14 = vpop.f32.mrf.mxu0  ;;  %v2511_v34 = vsub.s32 3, %v4259_v53 }
 0x1d3   : > { %v2693_v16 = vadd.f32 %v2611_v45, %v2586_v11  ;;  %v2593_v17 = vmul.f32 %v4599_v62, %v2053_v12  ;;  %v2055_v18 = vadd.f32 %v2054_v9, %v1981_v14  ;;  %v2749_v21 = vmax.f32 %v2748_v15, %v2692_v20  ;;  %v4700_v9 = vld [vmem:[%s4936_s7 + $0x50] sm:$0xff]  }
 0x1d4   : > { %v4638_v19 = vpop.f32.mrf.mxu0  ;;  %v4706_v14 = vrot.slane %v4595_v40, %v4271_v57  ;;  %v4712_v15 = vld [vmem:[%s4936_s7 + $0x10] sm:$0xff]  }
 0x1d5   : > { %v2700_v44 = vadd.f32 %v4614_v3, %v2593_v17  ;;  %v2594_v54 = vmul.f32 %v4608_v8, %v2055_v18  ;;  %v2756_v47 = vmax.f32 %v2755_v0, %v2693_v16 }
 0x1d6   : > { %v4642_v61 = vpop.f32.mrf.mxu0 }
 0x1d7   : > { %v2750_v22 = vmax.f32 %v2749_v21, %v2700_v44  ;;  %v2701_v23 = vadd.f32 %v2611_v45, %v2594_v54  ;;  %v4722_v21 = vrot.slane %v4595_v40, %v2511_v34 }
 0x1d8   : > { %v2168_v55 = vpop.f32.mrf.mxu0 }
 0x1d9   : > { %v2827_v24 = vrot.slane %v2750_v22, 4  ;;  %v2757_v25 = vmax.f32 %v2756_v47, %v2701_v23 }
 0x1da   : > { %v2170_v35 = vpop.f32.mrf.mxu0 }
 0x1db   : > { %v2828_v26 = vmax.f32 %v2750_v22, %v2827_v24  ;;  %v2833_v42 = vrot.slane %v2757_v25, 4 }
 0x1dc   : > { %v2174_v8 = vpop.f32.mrf.mxu0 }
 0x1dd   : > { %v2829_v62 = vrot.slane %v2828_v26, 2  ;;  %v2834_v39 = vmax.f32 %v2757_v25, %v2833_v42  ;;  %v4728_v25 = vrot.slane %v4604_v2, %v4271_v57  ;;  %v4742_v57 = vld [vmem:[%s4936_s7 + $0x40] sm:$0xff]  }
 0x1de   : > { %v2176_v48 = vpop.f32.mrf.mxu0 }
 0x1df   : > { %v2830_v27 = vmax.f32 %v2828_v26, %v2829_v62  ;;  %v2835_v29 = vrot.slane %v2834_v39, 2 }
 0x1e0   : > { %v2178_v33 = vpop.f32.mrf.mxu0 }
 0x1e1   : > { %v2831_v31 = vrot.slane %v2830_v27, 1  ;;  %v2836_v30 = vmax.f32 %v2834_v39, %v2835_v29 }
 0x1e2   : > { %v2180_v37 = vpop.f32.mrf.mxu0 }
 0x1e3   : > { %v2832_v3 = vmax.f32 %v2830_v27, %v2831_v31  ;;  %v2837_v10 = vrot.slane %v2836_v30, 1  ;;  %v4746_v27 = vrot.slane %v4604_v2, %v2511_v34 }
 0x1e4   : > { %v2184_v56 = vpop.f32.mrf.mxu0 }
 0x1e5   : > { %v2838_v28 = vmax.f32 %v2836_v30, %v2837_v10  ;;  %v2851_v41 = vmax.f32 %v2832_v3, 0.0 }
 0x1e6   : > { %v2186_v5 = vpop.f32.mrf.mxu0 }
 0x1e7   : > { %v2852_v45 = vmax.f32 %v2838_v28, 0.0  ;;  %v2887_v51 = vpack.c.bf16 %v2851_v41, %v2851_v41  ;;  %v4756_v41 = vld [vmem:[%s4936_s7] sm:$0xff]  }
 0x1e8   : > { %v2188_v20 = vpop.f32.mrf.mxu0 }
 0x1e9   : > { %v2888_v59 = vpack.c.bf16 %v2852_v45, %v2852_v45 }
 0x1ea   : > { %v2190_v44 = vpop.f32.mrf.mxu0 }
 0x1eb   : > { %3179 = vmatprep.mubr.bf16.mxu0 %v2888_v59 }
 0x1ec   : > { %3180 = vmatmul.mubr.bf16.vlgmr.msra.gmra.mxu0 %v2887_v51 }
 0x1ed   : > { %3891 = vmatpush3.bf16.msra.mxu0 %v4647_v49 }
 0x1ee   : > { %3892 = vmatprep.subr.bf16.mxu0 %v4652_v32 }
 0x1f1   : > { %3893 = vmatpush3.bf16.msra.mxu0 %v4658_v36 }
 0x1f2   : > { %3894 = vmatprep.subr.bf16.mxu0 %v4664_v1 }
 0x1f3   : > { %v2091_v43 = vpop.f32.mrf.mxu1 }
 0x1f4   : > { %v2165_v13 = vadd.f32 %v4638_v19, %v2091_v43  ;;  %v4718_v19 = vld [vmem:[%s4936_s7 + $0x48] sm:$0xff]  }
 0x1f5   : > { %v2093_v46 = vpop.f32.mrf.mxu1  ;;  %3895 = vmatpush3.bf16.msra.mxu0 %v4670_v38 }
 0x1f6   : > { %3896 = vmatprep.subr.bf16.mxu0 %v4676_v50  ;;  %v2167_v0 = vadd.f32 %v4642_v61, %v2093_v46  ;;  %v2539_v24 = vmul.f32 %v4706_v14, %v2165_v13  ;;  %v4734_v61 = vld [vmem:[%s4936_s7 + $0x8] sm:$0xff]  }
 0x1f7   : > { %v2095_v60 = vpop.f32.mrf.mxu1 }
 0x1f8   : > { %v2169_v11 = vadd.f32 %v2168_v55, %v2095_v60  ;;  %v2540_v39 = vmul.f32 %v4722_v21, %v2167_v0 }
 0x1f9   : > { %v2097_v6 = vpop.f32.mrf.mxu1  ;;  %3897 = vmatpush3.bf16.msra.mxu0 %v4682_v58 }
 0x1fa   : > { %3898 = vmatprep.subr.bf16.mxu0 %v4688_v4  ;;  %v2171_v16 = vadd.f32 %v2170_v35, %v2097_v6  ;;  %v2547_v54 = vmul.f32 %v4706_v14, %v2169_v11  ;;  %v2194_v35 = vpop.f32.mrf.mxu0 }
 0x1fb   : > { %v2101_v63 = vpop.f32.mrf.mxu1 }
 0x1fc   : > { %v2175_v17 = vadd.f32 %v2174_v8, %v2101_v63  ;;  %v2548_v26 = vmul.f32 %v4722_v21, %v2171_v16  ;;  %v2654_v31 = vadd.f32 %v4728_v25, %v2547_v54  ;;  %v2646_v8 = vadd.f32 %v4728_v25, %v2539_v24 }
 0x1fd   : > { %v2103_v12 = vpop.f32.mrf.mxu1  ;;  %3899 = vmatpush3.bf16.msra.mxu0 %v4694_v7 }
 0x1fe   : > { %3900 = vmatprep.subr.bf16.mxu0 %v4700_v9  ;;  %v2177_v47 = vadd.f32 %v2176_v48, %v2103_v12  ;;  %v2555_v42 = vmul.f32 %v4706_v14, %v2175_v17  ;;  %v2655_v45 = vadd.f32 %v4746_v27, %v2548_v26  ;;  %v2758_v46 = vmax.f32 %v2646_v8, %v2654_v31 }
 0x1ff   : > { %v2105_v18 = vpop.f32.mrf.mxu1 }
 0x200   : > { %v2179_v22 = vadd.f32 %v2178_v33, %v2105_v18  ;;  %v2556_v30 = vmul.f32 %v4722_v21, %v2177_v47  ;;  %v2662_v48 = vadd.f32 %v4728_v25, %v2555_v42 }
 0x201   : > { %v2107_v23 = vpop.f32.mrf.mxu1  ;;  %3901 = vmatpush3.bf16.msra.mxu0 %v4712_v15 }
 0x202   : > { %v2181_v55 = vadd.f32 %v2180_v37, %v2107_v23  ;;  %3902 = vmatprep.subr.bf16.mxu0 %v4718_v19  ;;  %v2563_v3 = vmul.f32 %v4706_v14, %v2179_v22  ;;  %v2647_v37 = vadd.f32 %v4746_v27, %v2540_v39  ;;  %v2663_v60 = vadd.f32 %v4746_v27, %v2556_v30 }
 0x203   : > { %v2111_v62 = vpop.f32.mrf.mxu1  ;;  %v2759_v13 = vmax.f32 %v2758_v46, %v2662_v48 }
 0x204   : > { %v2185_v29 = vadd.f32 %v2184_v56, %v2111_v62  ;;  %v2564_v59 = vmul.f32 %v4722_v21, %v2181_v55  ;;  %v2196_v56 = vpop.f32.mrf.mxu0  ;;  %v2765_v12 = vmax.f32 %v2647_v37, %v2655_v45 }
 0x205   : > { %v2113_v10 = vpop.f32.mrf.mxu1  ;;  %3903 = vmatpush3.bf16.msra.mxu0 %v4734_v61 }
 0x206   : > { %v2187_v28 = vadd.f32 %v2186_v5, %v2113_v10  ;;  %v2571_v51 = vmul.f32 %v4706_v14, %v2185_v29  ;;  %3904 = vmatprep.subr.bf16.mxu0 %v4742_v57  ;;  %v2670_v5 = vadd.f32 %v4728_v25, %v2563_v3  ;;  %v2671_v16 = vadd.f32 %v4746_v27, %v2564_v59  ;;  %v2198_v54 = vpop.f32.mrf.mxu0 }
 0x207   : > { %v2115_v33 = vpop.f32.mrf.mxu1  ;;  %v2766_v47 = vmax.f32 %v2765_v12, %v2663_v60 }
 0x208   : > { %v2189_v43 = vadd.f32 %v2188_v20, %v2115_v33  ;;  %v2572_v6 = vmul.f32 %v4722_v21, %v2187_v28  ;;  %v2678_v20 = vadd.f32 %v4728_v25, %v2571_v51  ;;  %v2760_v22 = vmax.f32 %v2759_v13, %v2670_v5  ;;  %v2200_v3 = vpop.f32.mrf.mxu0 }
 0x209   : > { %v2117_v63 = vpop.f32.mrf.mxu1  ;;  %3905 = vmatpush3.bf16.msra.mxu0 %v4756_v41  ;;  %v2767_v55 = vmax.f32 %v2766_v47, %v2671_v16 }
 0x20a   : > { %v2579_v34 = vmul.f32 %v4706_v14, %v2189_v43  ;;  %v2191_v11 = vadd.f32 %v2190_v44, %v2117_v63  ;;  %v2679_v23 = vadd.f32 %v4746_v27, %v2572_v6  ;;  %v2761_v62 = vmax.f32 %v2760_v22, %v2678_v20 }
 0x20b   : > { %v2121_v17 = vpop.f32.mrf.mxu1 }
 0x20c   : > { %v2580_v18 = vmul.f32 %v4722_v21, %v2191_v11  ;;  %v2195_v0 = vadd.f32 %v2194_v35, %v2121_v17  ;;  %v2686_v44 = vadd.f32 %v4728_v25, %v2579_v34  ;;  %v2768_v10 = vmax.f32 %v2767_v55, %v2679_v23 }
 0x20d   : > { %v2123_v24 = vpop.f32.mrf.mxu1 }
 0x20e   : > { %v2587_v26 = vmul.f32 %v4706_v14, %v2195_v0  ;;  %v2197_v42 = vadd.f32 %v2196_v56, %v2123_v24  ;;  %v2687_v29 = vadd.f32 %v4746_v27, %v2580_v18  ;;  %v2762_v28 = vmax.f32 %v2761_v62, %v2686_v44 }
 0x20f   : > { %v2125_v39 = vpop.f32.mrf.mxu1 }
 0x210   : > { %v2694_v31 = vadd.f32 %v4728_v25, %v2587_v26  ;;  %v2588_v35 = vmul.f32 %v4722_v21, %v2197_v42  ;;  %v2199_v30 = vadd.f32 %v2198_v54, %v2125_v39  ;;  %v2769_v33 = vmax.f32 %v2768_v10, %v2687_v29 }
 0x211   : > { %v2127_v8 = vpop.f32.mrf.mxu1 }
 0x212   : > { %v2695_v45 = vadd.f32 %v4746_v27, %v2588_v35  ;;  %v2595_v48 = vmul.f32 %v4706_v14, %v2199_v30  ;;  %v2201_v59 = vadd.f32 %v2200_v3, %v2127_v8  ;;  %v2763_v37 = vmax.f32 %v2762_v28, %v2694_v31 }
 0x213   : > { %v2310_v51 = vpop.f32.mrf.mxu1  ;;  %v2515_v14 = vsub.s32 4, %v4259_v53 }
 0x214   : > { %v2702_v43 = vadd.f32 %v4728_v25, %v2595_v48  ;;  %v2596_v56 = vmul.f32 %v4722_v21, %v2201_v59  ;;  %v2770_v5 = vmax.f32 %v2769_v33, %v2695_v45  ;;  %v2519_v25 = vsub.s32 5, %v4259_v53 }
 0x215   : > { %v2237_v46 = vpop.f32.mrf.mxu0  ;;  %v2312_v60 = vpop.f32.mrf.mxu1  ;;  %v4786_v23 = vrot.slane %v4595_v40, %v2515_v14  ;;  %v4793_v8 = vrot.slane %v4604_v2, %v2515_v14 }
 0x216   : > { %v2764_v6 = vmax.f32 %v2763_v37, %v2702_v43  ;;  %v2703_v63 = vadd.f32 %v4746_v27, %v2596_v56  ;;  %v2311_v26 = vadd.f32 %v2310_v51, %v2237_v46  ;;  %v4789_v62 = vrot.slane %v4595_v40, %v2519_v25 }
 0x217   : > { %v2239_v34 = vpop.f32.mrf.mxu0  ;;  %v2314_v11 = vpop.f32.mrf.mxu1 }
 0x218   : > { %v2839_v12 = vrot.slane %v2764_v6, 4  ;;  %v2771_v13 = vmax.f32 %v2770_v5, %v2703_v63  ;;  %v2313_v30 = vadd.f32 %v2312_v60, %v2239_v34  ;;  %v2541_v51 = vmul.f32 %v4786_v23, %v2311_v26 }
 0x219   : > { %v2241_v16 = vpop.f32.mrf.mxu0  ;;  %v2316_v20 = vpop.f32.mrf.mxu1 }
 0x21a   : > { %v2840_v17 = vmax.f32 %v2764_v6, %v2839_v12  ;;  %v2845_v18 = vrot.slane %v2771_v13, 4  ;;  %v2315_v22 = vadd.f32 %v2314_v11, %v2241_v16  ;;  %v2542_v5 = vmul.f32 %v4789_v62, %v2313_v30 }
 0x21b   : > { %v2243_v0 = vpop.f32.mrf.mxu0  ;;  %v2320_v21 = vpop.f32.mrf.mxu1  ;;  %v4800_v6 = vrot.slane %v4604_v2, %v2519_v25 }
 0x21c   : > { %v2841_v54 = vrot.slane %v2840_v17, 2  ;;  %v2846_v47 = vmax.f32 %v2771_v13, %v2845_v18  ;;  %v2317_v42 = vadd.f32 %v2316_v20, %v2243_v0  ;;  %v2549_v3 = vmul.f32 %v4786_v23, %v2315_v22 }
 0x21d   : > { %v2247_v27 = vpop.f32.mrf.mxu0  ;;  %v2322_v24 = vpop.f32.mrf.mxu1  ;;  %v2648_v20 = vadd.f32 %v4793_v8, %v2541_v51 }
 0x21e   : > { %v2842_v44 = vmax.f32 %v2840_v17, %v2841_v54  ;;  %v2847_v55 = vrot.slane %v2846_v47, 2  ;;  %v2321_v39 = vadd.f32 %v2320_v21, %v2247_v27  ;;  %v2550_v33 = vmul.f32 %v4789_v62, %v2317_v42 }
 0x21f   : > { %v2249_v29 = vpop.f32.mrf.mxu0  ;;  %v2324_v31 = vpop.f32.mrf.mxu1  ;;  %v2656_v63 = vadd.f32 %v4793_v8, %v2549_v3  ;;  %v2649_v27 = vadd.f32 %v4800_v6, %v2542_v5 }
 0x220   : > { %v2843_v35 = vrot.slane %v2842_v44, 1  ;;  %v2848_v10 = vmax.f32 %v2846_v47, %v2847_v55  ;;  %v2323_v28 = vadd.f32 %v2322_v24, %v2249_v29  ;;  %v2557_v43 = vmul.f32 %v4786_v23, %v2321_v39 }
 0x221   : > { %v2251_v45 = vpop.f32.mrf.mxu0  ;;  %v2326_v48 = vpop.f32.mrf.mxu1  ;;  %v2657_v17 = vadd.f32 %v4800_v6, %v2550_v33  ;;  %v2712_v24 = vmax.f32 %v2656_v63, 0.0 }
 0x222   : > { %v2844_v59 = vmax.f32 %v2842_v44, %v2843_v35  ;;  %v2325_v37 = vadd.f32 %v2324_v31, %v2251_v45  ;;  %v2849_v60 = vrot.slane %v2848_v10, 1  ;;  %v2558_v11 = vmul.f32 %v4789_v62, %v2323_v28 }
 0x223   : > { %v2253_v56 = vpop.f32.mrf.mxu0  ;;  %v2330_v46 = vpop.f32.mrf.mxu1  ;;  %v2664_v0 = vadd.f32 %v4793_v8, %v2557_v43  ;;  %v2708_v35 = vmax.f32 %v2648_v20, 0.0  ;;  %v2713_v28 = vmax.f32 %v2657_v17, 0.0 }
 0x224   : > { %v2327_v34 = vadd.f32 %v2326_v48, %v2253_v56  ;;  %v2565_v12 = vmul.f32 %v4786_v23, %v2325_v37  ;;  %v2850_v16 = vmax.f32 %v2848_v10, %v2849_v60  ;;  %v2853_v18 = vmax.f32 %v2844_v59, 0.0 }
 0x225   : > { %v2257_v13 = vpop.f32.mrf.mxu0  ;;  %v2332_v14 = vpop.f32.mrf.mxu1  ;;  %v2665_v26 = vadd.f32 %v4800_v6, %v2558_v11  ;;  %v2716_v45 = vmax.f32 %v2664_v0, 0.0  ;;  %v2709_v56 = vmax.f32 %v2649_v27, 0.0 }
 0x226   : > { %v2566_v25 = vmul.f32 %v4789_v62, %v2327_v34  ;;  %v2331_v21 = vadd.f32 %v2330_v46, %v2257_v13  ;;  %v2854_v22 = vmax.f32 %v2850_v16, 0.0  ;;  %v2672_v42 = vadd.f32 %v4793_v8, %v2565_v12 }
 0x227   : > { %v2259_v54 = vpop.f32.mrf.mxu0  ;;  %v2334_v47 = vpop.f32.mrf.mxu1  ;;  %v2889_v10 = vpack.c.bf16 %v2853_v18, %v2853_v18  ;;  %v2784_v46 = vadd.f32 %v2712_v24, %v2708_v35  ;;  %v2717_v60 = vmax.f32 %v2665_v26, 0.0  ;;  %v2791_v16 = vadd.f32 %v2713_v28, %v2709_v56 }
 0x228   : > { %v2333_v44 = vadd.f32 %v2332_v14, %v2259_v54  ;;  %v2573_v55 = vmul.f32 %v4786_v23, %v2331_v21  ;;  %v2890_v31 = vpack.c.bf16 %v2854_v22, %v2854_v22  ;;  %v2673_v48 = vadd.f32 %v4800_v6, %v2566_v25 }
 0x229   : > { %v2261_v39 = vpop.f32.mrf.mxu0  ;;  %v2336_v29 = vpop.f32.mrf.mxu1  ;;  %v2720_v5 = vmax.f32 %v2672_v42, 0.0  ;;  %v2785_v20 = vadd.f32 %v2784_v46, %v2716_v45 }
 0x22a   : > { %v2574_v30 = vmul.f32 %v4789_v62, %v2333_v44  ;;  %v2335_v3 = vadd.f32 %v2334_v47, %v2261_v39  ;;  %v2680_v59 = vadd.f32 %v4793_v8, %v2573_v55  ;;  %3219 = vmatprep.mubr.bf16.mxu1 %v2890_v31  ;;  %v2721_v17 = vmax.f32 %v2673_v48, 0.0 }
 0x22b   : > { %v2263_v51 = vpop.f32.mrf.mxu0  ;;  %v2340_v33 = vpop.f32.mrf.mxu1  ;;  %3220 = vmatmul.mubr.bf16.vlgmr.msra.gmra.mxu1 %v2889_v10  ;;  %v2786_v47 = vadd.f32 %v2785_v20, %v2720_v5 }
 0x22c   : > { %v2581_v37 = vmul.f32 %v4786_v23, %v2335_v3  ;;  %v2337_v43 = vadd.f32 %v2336_v29, %v2263_v51  ;;  %3913 = vmatpush3.bf16.msra.mxu1 %v4647_v49  ;;  %v2681_v11 = vadd.f32 %v4800_v6, %v2574_v30  ;;  %v2724_v18 = vmax.f32 %v2680_v59, 0.0 }
 0x22d   : > { %v2267_v63 = vpop.f32.mrf.mxu0  ;;  %v2342_v34 = vpop.f32.mrf.mxu1  ;;  %3914 = vmatprep.subr.bf16.mxu1 %v4652_v32  ;;  %v2792_v49 = vadd.f32 %v2791_v16, %v2717_v60 }
 0x22e   : > { %v2688_v12 = vadd.f32 %v4793_v8, %v2581_v37  ;;  %v2582_v13 = vmul.f32 %v4789_v62, %v2337_v43  ;;  %v2341_v14 = vadd.f32 %v2340_v33, %v2267_v63  ;;  %v2725_v24 = vmax.f32 %v2681_v11, 0.0 }
 0x22f   : > { %v2269_v0 = vpop.f32.mrf.mxu0  ;;  %v2344_v25 = vpop.f32.mrf.mxu1  ;;  %v2793_v42 = vadd.f32 %v2792_v49, %v2721_v17  ;;  %v2787_v55 = vadd.f32 %v2786_v47, %v2724_v18  ;;  %v2523_v47 = vsub.s32 6, %v4259_v53 }
 0x230   : > { %v2689_v21 = vadd.f32 %v4800_v6, %v2582_v13  ;;  %v2589_v54 = vmul.f32 %v4786_v23, %v2341_v14  ;;  %v2343_v22 = vadd.f32 %v2342_v34, %v2269_v0  ;;  %3915 = vmatpush3.bf16.msra.mxu1 %v4658_v36  ;;  %v2728_v44 = vmax.f32 %v2688_v12, 0.0 }
 0x231   : > { %v2271_v27 = vpop.f32.mrf.mxu0  ;;  %3916 = vmatprep.subr.bf16.mxu1 %v4664_v1  ;;  %v2346_v29 = vpop.f32.mrf.mxu1  ;;  %v2794_v45 = vadd.f32 %v2793_v42, %v2725_v24 }
 0x232   : > { %v2696_v32 = vadd.f32 %v4793_v8, %v2589_v54  ;;  %v2345_v26 = vadd.f32 %v2344_v25, %v2271_v27  ;;  %v2590_v39 = vmul.f32 %v4789_v62, %v2343_v22  ;;  %v2729_v35 = vmax.f32 %v2689_v21, 0.0 }
 0x233   : > { %v2273_v31 = vpop.f32.mrf.mxu0  ;;  %v2788_v48 = vadd.f32 %v2787_v55, %v2728_v44  ;;  %v2527_v27 = vsub.s32 7, %v4259_v53 }
 0x234   : > { %v2732_v30 = vmax.f32 %v2696_v32, 0.0  ;;  %v2597_v3 = vmul.f32 %v4786_v23, %v2345_v26  ;;  %v2347_v10 = vadd.f32 %v2346_v29, %v2273_v31  ;;  %v2697_v36 = vadd.f32 %v4800_v6, %v2590_v39  ;;  %3917 = vmatpush3.bf16.msra.mxu1 %v4670_v38 }
 0x235   : > { %v2456_v28 = vpop.f32.mrf.mxu0  ;;  %3918 = vmatprep.subr.bf16.mxu1 %v4676_v50  ;;  %v2795_v33 = vadd.f32 %v2794_v45, %v2729_v35  ;;  %v4847_v32 = vrot.slane %v4595_v40, %v2523_v47  ;;  %v4850_v31 = vrot.slane %v4595_v40, %v2527_v27  ;;  %v4861_v40 = vrot.slane %v4604_v2, %v2527_v27 }
 0x236   : > { %v2704_v1 = vadd.f32 %v4793_v8, %v2597_v3  ;;  %v2598_v59 = vmul.f32 %v4789_v62, %v2347_v10  ;;  %v2733_v51 = vmax.f32 %v2697_v36, 0.0  ;;  %v2789_v37 = vadd.f32 %v2788_v48, %v2732_v30 }
 0x237   : > { %v2458_v56 = vpop.f32.mrf.mxu0  ;;  %v4855_v36 = vrot.slane %v4604_v2, %v2523_v47 }
 0x238   : > { %v2736_v43 = vmax.f32 %v2704_v1, 0.0  ;;  %v2705_v23 = vadd.f32 %v4800_v6, %v2598_v59  ;;  %3919 = vmatpush3.bf16.msra.mxu1 %v4682_v58  ;;  %v2796_v46 = vadd.f32 %v2795_v33, %v2733_v51 }
 0x239   : > { %3920 = vmatprep.subr.bf16.mxu1 %v4688_v4  ;;  %v2460_v63 = vpop.f32.mrf.mxu0 }
 0x23a   : > { %v2790_v60 = vadd.f32 %v2789_v37, %v2736_v43  ;;  %v2737_v38 = vmax.f32 %v2705_v23, 0.0 }
 0x23b   : > { %v2462_v6 = vpop.f32.mrf.mxu0 }
 0x23c   : > { %v2859_v5 = vrot.slane %v2790_v60, 4  ;;  %v2797_v8 = vadd.f32 %v2796_v46, %v2737_v38  ;;  %3921 = vmatpush3.bf16.msra.mxu1 %v4694_v7 }
 0x23d   : > { %3922 = vmatprep.subr.bf16.mxu1 %v4700_v9  ;;  %v2466_v14 = vpop.f32.mrf.mxu0 }
 0x23e   : > { %v2860_v50 = vadd.f32 %v2859_v5, %v2790_v60  ;;  %v2865_v62 = vrot.slane %v2797_v8, 4 }
 0x23f   : > { %v2468_v9 = vpop.f32.mrf.mxu0 }
 0x240   : > { %v2861_v34 = vrot.slane %v2860_v50, 2  ;;  %v2866_v11 = vadd.f32 %v2865_v62, %v2797_v8  ;;  %3923 = vmatpush3.bf16.msra.mxu1 %v4712_v15 }
 0x241   : > { %3924 = vmatprep.subr.bf16.mxu1 %v4718_v19  ;;  %v2470_v0 = vpop.f32.mrf.mxu0 }
 0x242   : > { %v2867_v58 = vrot.slane %v2866_v11, 2  ;;  %v2862_v12 = vadd.f32 %v2861_v34, %v2860_v50 }
 0x243   : > { %v2472_v19 = vpop.f32.mrf.mxu0 }
 0x244   : > { %v2868_v13 = vadd.f32 %v2867_v58, %v2866_v11  ;;  %v2863_v4 = vrot.slane %v2862_v12, 1  ;;  %3925 = vmatpush3.bf16.msra.mxu1 %v4734_v61 }
 0x245   : > { %3926 = vmatprep.subr.bf16.mxu1 %v4742_v57  ;;  %v2476_v54 = vpop.f32.mrf.mxu0 }
 0x246   : > { %v2869_v16 = vrot.slane %v2868_v13, 1  ;;  %v2864_v7 = vadd.f32 %v2863_v4, %v2862_v12 }
 0x247   : > { %v2478_v22 = vpop.f32.mrf.mxu0 }
 0x248   : > { %v2870_v20 = vadd.f32 %v2869_v16, %v2868_v13  ;;  %v2883_v17 = vmul.f32 0.015625, %v2864_v7  ;;  %3927 = vmatpush3.bf16.msra.mxu1 %v4756_v41 }
 0x249   : > { %v2480_v42 = vpop.f32.mrf.mxu0 }
 0x24a   : > { %v2884_v18 = vmul.f32 0.015625, %v2870_v20  ;;  %v3231_v25 = vpack.c.bf16 %v2883_v17, %v2883_v17 }
 0x24b   : > { %v2482_v45 = vpop.f32.mrf.mxu0 }
 0x24c   : > { %v3232_v15 = vpack.c.bf16 %v2884_v18, %v2884_v18 }
 0x24d   : > { %v2486_v5 = vpop.f32.mrf.mxu0 }
 0x24e   : > { %3395 = vmatprep.mubr.bf16.mxu0 %v3232_v15 }
 0x24f   : > { %3396 = vmatmul.mubr.bf16.vlgmr.msra.gmra.mxu0 %v3231_v25  ;;  %v2488_v7 = vpop.f32.mrf.mxu0 }
 0x251   : > { %v2490_v27 = vpop.f32.mrf.mxu0 }
 0x253   : > { %v2383_v21 = vpop.f32.mrf.mxu1 }
 0x254   : > { %v2457_v41 = vadd.f32 %v2456_v28, %v2383_v21 }
 0x255   : > { %v2385_v49 = vpop.f32.mrf.mxu1 }
 0x256   : > { %v2459_v29 = vadd.f32 %v2458_v56, %v2385_v49  ;;  %v2543_v10 = vmul.f32 %v4847_v32, %v2457_v41 }
 0x257   : > { %v2387_v61 = vpop.f32.mrf.mxu1 }
 0x258   : > { %v2461_v24 = vadd.f32 %v2460_v63, %v2387_v61  ;;  %v2544_v51 = vmul.f32 %v4850_v31, %v2459_v29  ;;  %v2650_v46 = vadd.f32 %v4855_v36, %v2543_v10 }
 0x259   : > { %v2389_v57 = vpop.f32.mrf.mxu1 }
 0x25a   : > { %v2463_v26 = vadd.f32 %v2462_v6, %v2389_v57  ;;  %v2551_v35 = vmul.f32 %v4847_v32, %v2461_v24  ;;  %v2651_v50 = vadd.f32 %v4861_v40, %v2544_v51  ;;  %v2710_v13 = vmax.f32 %v2650_v46, 0.0 }
 0x25b   : > { %v2393_v44 = vpop.f32.mrf.mxu1 }
 0x25c   : > { %v2467_v55 = vadd.f32 %v2466_v14, %v2393_v44  ;;  %v2552_v28 = vmul.f32 %v4850_v31, %v2463_v26  ;;  %v2658_v33 = vadd.f32 %v4855_v36, %v2551_v35  ;;  %v2711_v15 = vmax.f32 %v2651_v50, 0.0 }
 0x25d   : > { %v2395_v39 = vpop.f32.mrf.mxu1 }
 0x25e   : > { %v2469_v30 = vadd.f32 %v2468_v9, %v2395_v39  ;;  %v2559_v48 = vmul.f32 %v4847_v32, %v2467_v55  ;;  %v2659_v60 = vadd.f32 %v4861_v40, %v2552_v28  ;;  %v2714_v62 = vmax.f32 %v2658_v33, 0.0 }
 0x25f   : > { %v2397_v3 = vpop.f32.mrf.mxu1 }
 0x260   : > { %v2471_v1 = vadd.f32 %v2470_v0, %v2397_v3  ;;  %v2560_v43 = vmul.f32 %v4850_v31, %v2469_v30  ;;  %v2666_v8 = vadd.f32 %v4855_v36, %v2559_v48  ;;  %v2715_v4 = vmax.f32 %v2659_v60, 0.0 }
 0x261   : > { %v2399_v59 = vpop.f32.mrf.mxu1  ;;  %v2798_v0 = vadd.f32 %v2714_v62, %v2710_v13 }
 0x262   : > { %v2473_v37 = vadd.f32 %v2472_v19, %v2399_v59  ;;  %v2567_v23 = vmul.f32 %v4847_v32, %v2471_v1  ;;  %v2667_v6 = vadd.f32 %v4861_v40, %v2560_v43  ;;  %v2718_v20 = vmax.f32 %v2666_v8, 0.0  ;;  %v2492_v59 = vpop.f32.mrf.mxu0 }
 0x263   : > { %v2403_v56 = vpop.f32.mrf.mxu1  ;;  %v2805_v47 = vadd.f32 %v2715_v4, %v2711_v15 }
 0x264   : > { %v2477_v38 = vadd.f32 %v2476_v54, %v2403_v56  ;;  %v2568_v63 = vmul.f32 %v4850_v31, %v2473_v37  ;;  %v2674_v58 = vadd.f32 %v4855_v36, %v2567_v23  ;;  %v2719_v19 = vmax.f32 %v2667_v6, 0.0 }
 0x265   : > { %v2405_v2 = vpop.f32.mrf.mxu1  ;;  %v2799_v24 = vadd.f32 %v2798_v0, %v2718_v20 }
 0x266   : > { %v2575_v34 = vmul.f32 %v4847_v32, %v2477_v38  ;;  %v2479_v11 = vadd.f32 %v2478_v22, %v2405_v2  ;;  %v2675_v9 = vadd.f32 %v4861_v40, %v2568_v63  ;;  %v2722_v21 = vmax.f32 %v2674_v58, 0.0 }
 0x267   : > { %v2407_v12 = vpop.f32.mrf.mxu1  ;;  %v2806_v29 = vadd.f32 %v2805_v47, %v2719_v19 }
 0x268   : > { %v2576_v14 = vmul.f32 %v4850_v31, %v2479_v11  ;;  %v2481_v16 = vadd.f32 %v2480_v42, %v2407_v12  ;;  %v2682_v17 = vadd.f32 %v4855_v36, %v2575_v34  ;;  %v2723_v44 = vmax.f32 %v2675_v9, 0.0 }
 0x269   : > { %v2409_v18 = vpop.f32.mrf.mxu1  ;;  %v2800_v35 = vadd.f32 %v2799_v24, %v2722_v21 }
 0x26a   : > { %v2583_v25 = vmul.f32 %v4847_v32, %v2481_v16  ;;  %v2683_v54 = vadd.f32 %v4861_v40, %v2576_v14  ;;  %v2483_v49 = vadd.f32 %v2482_v45, %v2409_v18  ;;  %v2726_v41 = vmax.f32 %v2682_v17, 0.0 }
 0x26b   : > { %v2413_v61 = vpop.f32.mrf.mxu1  ;;  %v2807_v51 = vadd.f32 %v2806_v29, %v2723_v44 }
 0x26c   : > { %v2690_v22 = vadd.f32 %v4855_v36, %v2583_v25  ;;  %v2487_v57 = vadd.f32 %v2486_v5, %v2413_v61  ;;  %v2584_v26 = vmul.f32 %v4850_v31, %v2483_v49  ;;  %v2727_v30 = vmax.f32 %v2683_v54, 0.0 }
 0x26d   : > { %v2415_v42 = vpop.f32.mrf.mxu1  ;;  %v2801_v33 = vadd.f32 %v2800_v35, %v2726_v41  ;;  %v3403_v35 = vld [vmem:[%s4937_s8] sm:$0x1] }
 0x26e   : > { %v2591_v55 = vmul.f32 %v4847_v32, %v2487_v57  ;;  %v2489_v39 = vadd.f32 %v2488_v7, %v2415_v42  ;;  %v2691_v3 = vadd.f32 %v4861_v40, %v2584_v26  ;;  %v2730_v28 = vmax.f32 %v2690_v22, 0.0 }
 0x26f   : > { %v2417_v10 = vpop.f32.mrf.mxu1  ;;  %v2808_v38 = vadd.f32 %v2807_v51, %v2727_v30 }
 0x270   : > { %v2698_v45 = vadd.f32 %v4855_v36, %v2591_v55  ;;  %v2592_v48 = vmul.f32 %v4850_v31, %v2489_v39  ;;  %v2491_v1 = vadd.f32 %v2490_v27, %v2417_v10  ;;  %v2731_v37 = vmax.f32 %v2691_v3, 0.0  ;;  %v3405_v3 = vld [vmem:[%s4937_s8 + $0x1] sm:$0x1] }
 0x271   : > { %v2419_v43 = vpop.f32.mrf.mxu1  ;;  %v2802_v5 = vadd.f32 %v2801_v33, %v2730_v28  ;;  %v4098_v33 = vmov 1966171168  }
 0x272   : > { %v2734_v23 = vmax.f32 %v2698_v45, 0.0  ;;  %v2699_v56 = vadd.f32 %v4861_v40, %v2592_v48  ;;  %v2599_v46 = vmul.f32 %v4847_v32, %v2491_v1  ;;  %v2493_v60 = vadd.f32 %v2492_v59, %v2419_v43  ;;  %v3451_v45 = vld [vmem:[%s4938_s9] sm:$0x1] }
 0x273   : > { %v2809_v50 = vadd.f32 %v2808_v38, %v2731_v37  ;;  %v3227_v1 = vld [vmem:[%s4935_s6] sm:$0x1]  ;;  %v3464_v37 = vunpack.c.l.s4 %v4098_v33  ;;  %v3229_v38 = vld [vmem:[%s4935_s6 + $0x1] sm:$0x1] }
 0x274   : > { %v2735_v8 = vmax.f32 %v2699_v56, 0.0  ;;  %v2706_v63 = vadd.f32 %v4855_v36, %v2599_v46  ;;  %v2600_v2 = vmul.f32 %v4850_v31, %v2493_v60  ;;  %v2803_v62 = vadd.f32 %v2802_v5, %v2734_v23  ;;  %v3453_v23 = vld [vmem:[%s4938_s9 + $0x1] sm:$0x1] }
 0x276   : > { %v2738_v34 = vmax.f32 %v2706_v63, 0.0  ;;  %v2707_v11 = vadd.f32 %v4861_v40, %v2600_v2  ;;  %v2810_v6 = vadd.f32 %v2809_v50, %v2735_v8  ;;  %v3465_v63 = vunpack.c.0.s8 %v3464_v37  ;;  %v3455_v50 = vld [vmem:[%s4939_s10] sm:$0x1] }
 0x278   : > { %v2804_v58 = vadd.f32 %v2803_v62, %v2738_v34  ;;  %v2739_v12 = vmax.f32 %v2707_v11, 0.0  ;;  %v3457_v11 = vld [vmem:[%s4939_s10 + $0x1] sm:$0x1] }
 0x27a   : > { %v2871_v13 = vrot.slane %v2804_v58, 4  ;;  %v2811_v4 = vadd.f32 %v2810_v6, %v2739_v12 }
 0x27c   : > { %v2872_v14 = vadd.f32 %v2871_v13, %v2804_v58  ;;  %v2877_v32 = vrot.slane %v2811_v4, 4  ;;  %v3468_v58 = vsub.s32 %v3465_v63, %v4259_v53 }
 0x27e   : > { %v2873_v16 = vrot.slane %v2872_v14, 2  ;;  %v2878_v7 = vadd.f32 %v2877_v32, %v2811_v4 }
 0x280   : > { %v2879_v20 = vrot.slane %v2878_v7, 2  ;;  %v2874_v9 = vadd.f32 %v2873_v16, %v2872_v14 }
 0x282   : > { %v2880_v17 = vadd.f32 %v2879_v20, %v2878_v7  ;;  %v2875_v36 = vrot.slane %v2874_v9, 1 }
 0x284   : > { %v2881_v18 = vrot.slane %v2880_v17, 1  ;;  %v2876_v31 = vadd.f32 %v2875_v36, %v2874_v9 }
 0x286   : > { %v2882_v15 = vadd.f32 %v2881_v18, %v2880_v17  ;;  %v2885_v0 = vmul.f32 0.015625, %v2876_v31 }
 0x288   : > { %v2886_v25 = vmul.f32 0.015625, %v2882_v15  ;;  %v3233_v40 = vpack.c.bf16 %v2885_v0, %v2885_v0 }
 0x28a   : > { %v3234_v19 = vpack.c.bf16 %v2886_v25, %v2886_v25 }
 0x28c   : > { %3440 = vmatprep.mubr.bf16.mxu1 %v3234_v19 }
 0x28d   : > { %3441 = vmatmul.mubr.bf16.vlgmr.msra.gmra.mxu1 %v3233_v40 }
 0x2ac   : > { %v3862_v21 = vpop.f32.mrf.mxu0 }
 0x2ae   : > { %v3863_v54 = vpop.f32.mrf.mxu0 }
 0x2af   : > { %v3864_v49 = vadd.f32 %v3863_v54, %v3862_v21 }
 0x2b0   : > { %v3865_v61 = vpop.f32.mrf.mxu0 }
 0x2b2   : > { %v3866_v47 = vpop.f32.mrf.mxu0 }
 0x2eb   : > { %v3884_v22 = vpop.f32.mrf.mxu1 }
 0x2ed   : > { %v3885_v57 = vpop.f32.mrf.mxu1 }
 0x2ee   : > { %v3886_v27 = vadd.f32 %v3885_v57, %v3884_v22 }
 0x2ef   : > { %v3887_v24 = vpop.f32.mrf.mxu1 }
 0x2f0   : > { %v3222_v44 = vadd.f32 %v3886_v27, %v3864_v49 }
 0x2f1   : > { %v3888_v41 = vpop.f32.mrf.mxu1 }
 0x2f2   : > { %v3228_v46 = vmul.f32 %v3227_v1, %v3222_v44 }
 0x2f4   : > { %v3230_v62 = vadd.f32 %v3229_v38, %v3228_v46 }
 0x30f   : > { %v3906_v26 = vpop.f32.mrf.mxu0 }
 0x311   : > { %v3907_v42 = vpop.f32.mrf.mxu0 }
 0x312   : > { %v3908_v29 = vadd.f32 %v3907_v42, %v3906_v26 }
 0x313   : > { %v3909_v55 = vpop.f32.mrf.mxu0 }
 0x314   : > { %v3404_v30 = vmul.f32 %v3908_v29, %v3403_v35 }
 0x315   : > { %v3910_v39 = vpop.f32.mrf.mxu0 }
 0x316   : > { %v3406_v10 = vadd.f32 %v3405_v3, %v3404_v30 }
 0x318   : > { %v3407_v28 = vmax.f32 %v3406_v10, 0.0 }
 0x31a   : > { %v3452_v51 = vmul.f32 %v3451_v45, %v3407_v28 }
 0x31c   : > { %v3454_v8 = vadd.f32 %v3453_v23, %v3452_v51 }
 0x31e   : > { %v3462_v6 = vcombine.low %v3230_v62, %v3454_v8 }
 0x320   : > { %v3469_v4 = vrot.slane %v3462_v6, %v3468_v58 }
 0x34d   : > { %v3928_v48 = vpop.f32.mrf.mxu1 }
 0x34f   : > { %v3929_v59 = vpop.f32.mrf.mxu1 }
 0x350   : > { %v3930_v43 = vadd.f32 %v3929_v59, %v3928_v48 }
 0x351   : > { %v3931_v56 = vpop.f32.mrf.mxu1 }
 0x352   : > { %v3448_v60 = vmul.f32 %v3930_v43, %v3403_v35 }
 0x353   : > { %v3932_v5 = vpop.f32.mrf.mxu1 }
 0x354   : > { %v3449_v2 = vadd.f32 %v3448_v60, %v3405_v3 }
 0x356   : > { %v3450_v34 = vmax.f32 %v3449_v2, 0.0 }
 0x358   : > { %v3456_v12 = vmul.f32 %v3455_v50, %v3450_v34 }
 0x35a   : > { %v3458_v13 = vadd.f32 %v3457_v11, %v3456_v12 }
 0x35c   : > { %v3476_v14 = vrot.slane %v3458_v13, %v3468_v58 }
 0x35e   : > { %v3477_v32 = vcombine.low %v3469_v4, %v3476_v14 }
 0x360   : > { %v3484_v16 = vrot.slane %v3477_v32, %v3468_v58 }
 0x362   : > { %3490 = vst.msk [vmem:[%s427_s27] sm:$0x7] %vm3488_vm2, %v3484_v16 }
 0x363 PF: > { %s22_s19 = sadd.s32 1, %s4092_s19   ;;  %s4943_s17 = smov %s4088_s18 }
 0x364   : > { %p19_p2 = scmp.ge.s32.totalorder %s22_s19, 4   ;;  %s4944_s18 = smov %s4946_s21 }
 0x366   :  { %21 = sbr.rel (!%p19_p2) target bundleno = 2 (0x2), region = 109 }
 0x36b   :  { %3510 = vsyncpa [#allocation5], 1 }
 0x36c   :  { %3512 = vsyncpa [#allocation5 + $0x1], 1 }

</bundles_post_ra>
